<compile_context>
chip_gen: v7x
topology: tpu7x:2x2x1
jax: 0.10.0
libtpu: 0.0.40
codegen_flags: <defaults>
</compile_context>

<pallas_src>
import functools
import numpy as np
import jax
import jax.numpy as jnp
from jax.experimental import pallas as pl
from jax.experimental.pallas import tpu as pltpu

LANE = 128                              # lane padding for feature/weight dims
VMEM_LIMIT_BYTES = 48 * 1024 * 1024     # fits v7x (64 MiB) with headroom

_COMPILER_PARAMS = pltpu.CompilerParams(
    dimension_semantics=("parallel",),  # dst-row tiles split across TCs
    vmem_limit_bytes=VMEM_LIMIT_BYTES)


# ----------------------------- kernels --------------------------------------
def _sage_tile(adj_norm, h_all, h_dst, ws_ref, wn_ref, b_ref):
    """SAGEConv('mean') for one dst-row tile.

    adj_norm : (T, N)  bf16, rows pre-divided by max(deg, 1) in the wrapper
               (zero-in-degree rows are all-zero -> zero neighbour term)
    h_all    : (N, D)  bf16 source features
    h_dst    : (T, D)  bf16 destination-row features
    ws/wn    : (D, Do) bf16 weights;  b: (1, Do) f32 bias.
    Returns f32 (T, Do); all dots accumulate in f32 on the MXU.
    """
    mean = jnp.dot(adj_norm, h_all, preferred_element_type=jnp.float32)
    return (jnp.dot(h_dst, ws_ref[...], preferred_element_type=jnp.float32)
            + jnp.dot(mean.astype(wn_ref.dtype), wn_ref[...],
                      preferred_element_type=jnp.float32)
            + b_ref[...])


def dual_sage_shared_kernel(adj_l_ref, adj_g_ref, h_ref,
                            wls_ref, wln_ref, bl_ref,
                            wgs_ref, wgn_ref, bg_ref,
                            out_l_ref, out_g_ref, *, tile):
    """Layer 0 of BOTH GNNs (shared feat input) + ReLU, one dst-row tile."""
    row0 = pl.multiple_of(pl.program_id(0) * tile, tile)
    h_all = h_ref[...]
    h_dst = h_ref[pl.ds(row0, tile), :]
    ol = _sage_tile(adj_l_ref[...], h_all, h_dst, wls_ref, wln_ref, bl_ref)
    og = _sage_tile(adj_g_ref[...], h_all, h_dst, wgs_ref, wgn_ref, bg_ref)
    out_l_ref[...] = jnp.maximum(ol, 0.0).astype(out_l_ref.dtype)  # dropout=id
    out_g_ref[...] = jnp.maximum(og, 0.0).astype(out_g_ref.dtype)


def dual_sage_kernel(adj_l_ref, adj_g_ref, hl_ref, hg_ref,
                     wls_ref, wln_ref, bl_ref,
                     wgs_ref, wgn_ref, bg_ref,
                     out_l_ref, out_g_ref, *, tile):
    """Middle SAGE layer of BOTH GNNs + ReLU (not used by the 2-layer demo)."""
    row0 = pl.multiple_of(pl.program_id(0) * tile, tile)
    ol = _sage_tile(adj_l_ref[...], hl_ref[...], hl_ref[pl.ds(row0, tile), :],
                    wls_ref, wln_ref, bl_ref)
    og = _sage_tile(adj_g_ref[...], hg_ref[...], hg_ref[pl.ds(row0, tile), :],
                    wgs_ref, wgn_ref, bg_ref)
    out_l_ref[...] = jnp.maximum(ol, 0.0).astype(out_l_ref.dtype)
    out_g_ref[...] = jnp.maximum(og, 0.0).astype(out_g_ref.dtype)


def head_kernel(adj_l_ref, adj_g_ref, hl_ref, hg_ref,
                wls_ref, wln_ref, bl_ref,
                wgs_ref, wgn_ref, bg_ref,
                w1l_ref, w1g_ref, b1_ref, bns_ref, bnb_ref,
                w2_ref, b2_ref, out_ref, *, tile):
    """Last SAGE layer of both GNNs + (virtual) concat + 2-layer MLP head."""
    row0 = pl.multiple_of(pl.program_id(0) * tile, tile)
    local_emb = _sage_tile(adj_l_ref[...], hl_ref[...],
                           hl_ref[pl.ds(row0, tile), :],
                           wls_ref, wln_ref, bl_ref)
    global_emb = _sage_tile(adj_g_ref[...], hg_ref[...],
                            hg_ref[pl.ds(row0, tile), :],
                            wgs_ref, wgn_ref, bg_ref)
    # MLP layer 1 on concat([local, global]) without materialising the concat
    # (W1 split by rows in the wrapper).  MLP / BN / ReLU stay f32.
    z = (jnp.dot(local_emb, w1l_ref[...], preferred_element_type=jnp.float32)
         + jnp.dot(global_emb, w1g_ref[...], preferred_element_type=jnp.float32)
         + b1_ref[...])
    z = z * bns_ref[...] + bnb_ref[...]             # BatchNorm1d (inference)
    z = jnp.maximum(z, 0.0)                         # ReLU (dropout = identity)
    out_ref[...] = (jnp.dot(z, w2_ref[...], preferred_element_type=jnp.float32)
                    + b2_ref[...])


# ----------------------------- wrappers --------------------------------------
def _full_spec(shape):
    # Constant index map -> block is DMA'd once and stays resident across the
    # grid (Pallas skips re-fetch when the block index does not change).
    nd = len(shape)
    return pl.BlockSpec(shape, lambda i, _nd=nd: (0,) * _nd)


def _row_spec(tile, cols):
    return pl.BlockSpec((tile, cols), lambda i: (i, 0))


def dual_sage_shared(adj_l, adj_g, h, par_l, par_g, *, tile):
    n = adj_l.shape[0]
    assert n % tile == 0, "N must be a multiple of the dst-row tile"
    dpad = par_l[0].shape[1]
    kernel = functools.partial(dual_sage_shared_kernel, tile=tile)
    return pl.pallas_call(
        kernel,
        out_shape=(jax.ShapeDtypeStruct((n, dpad), jnp.bfloat16),
                   jax.ShapeDtypeStruct((n, dpad), jnp.bfloat16)),
        grid_spec=pltpu.PrefetchScalarGridSpec(
            num_scalar_prefetch=0,
            grid=(n // tile,),
            in_specs=[_row_spec(tile, n), _row_spec(tile, n),
                      _full_spec(h.shape)]
                     + [_full_spec(p.shape) for p in par_l]
                     + [_full_spec(p.shape) for p in par_g],
            out_specs=[_row_spec(tile, dpad), _row_spec(tile, dpad)]),
        compiler_params=_COMPILER_PARAMS,
    )(adj_l, adj_g, h, *par_l, *par_g)


def dual_sage(adj_l, adj_g, hl, hg, par_l, par_g, *, tile):
    n = adj_l.shape[0]
    assert n % tile == 0, "N must be a multiple of the dst-row tile"
    dpad = par_l[0].shape[1]
    kernel = functools.partial(dual_sage_kernel, tile=tile)
    return pl.pallas_call(
        kernel,
        out_shape=(jax.ShapeDtypeStruct((n, dpad), jnp.bfloat16),
                   jax.ShapeDtypeStruct((n, dpad), jnp.bfloat16)),
        grid_spec=pltpu.PrefetchScalarGridSpec(
            num_scalar_prefetch=0,
            grid=(n // tile,),
            in_specs=[_row_spec(tile, n), _row_spec(tile, n),
                      _full_spec(hl.shape), _full_spec(hg.shape)]
                     + [_full_spec(p.shape) for p in par_l]
                     + [_full_spec(p.shape) for p in par_g],
            out_specs=[_row_spec(tile, dpad), _row_spec(tile, dpad)]),
        compiler_params=_COMPILER_PARAMS,
    )(adj_l, adj_g, hl, hg, *par_l, *par_g)


def fused_head(adj_l, adj_g, hl, hg, par_l, par_g, mlp, *, tile):
    n = adj_l.shape[0]
    assert n % tile == 0, "N must be a multiple of the dst-row tile"
    cpad = mlp[-2].shape[1]          # w2 is (M_pad, C_pad)
    kernel = functools.partial(head_kernel, tile=tile)
    return pl.pallas_call(
        kernel,
        out_shape=jax.ShapeDtypeStruct((n, cpad), jnp.float32),
        grid_spec=pltpu.PrefetchScalarGridSpec(
            num_scalar_prefetch=0,
            grid=(n // tile,),
            in_specs=[_row_spec(tile, n), _row_spec(tile, n),
                      _full_spec(hl.shape), _full_spec(hg.shape)]
                     + [_full_spec(p.shape) for p in par_l]
                     + [_full_spec(p.shape) for p in par_g]
                     + [_full_spec(p.shape) for p in mlp],
            out_specs=_row_spec(tile, cpad)),
        compiler_params=_COMPILER_PARAMS,
    )(adj_l, adj_g, hl, hg, *par_l, *par_g, *mlp)


def local_global_gnn_forward(adj_l_norm, adj_g_norm, feat_pad,
                             local_layers, global_layers, mlp, *, tile=128):
    """LocalGlobalGNN.forward (inference, residual=False, sage/sage).

    adj_*_norm: (N, N) bf16 row-normalised adjacency (adj / max(deg,1)).
    local_layers / global_layers: list of (w_self, w_neigh, bias) per SAGEConv
    (weights bf16, bias f32, lane-padded); mlp = (w1_local, w1_global, b1,
    bn_scale, bn_shift, w2, b2) all f32 lane-padded.
    """
    assert len(local_layers) == len(global_layers) >= 2
    # layer 0: both GNNs consume the same feat -> single shared h input
    hl, hg = dual_sage_shared(adj_l_norm, adj_g_norm, feat_pad,
                              local_layers[0], global_layers[0], tile=tile)
    # middle layers (none for the 2-layer demo config)
    for li in range(1, len(local_layers) - 1):
        hl, hg = dual_sage(adj_l_norm, adj_g_norm, hl, hg,
                           local_layers[li], global_layers[li], tile=tile)
    # last SAGE layer of both GNNs + concat-free MLP head
    return fused_head(adj_l_norm, adj_g_norm, hl, hg,
                      local_layers[-1], global_layers[-1], mlp, tile=tile)


# ---------------- numpy reference (mirrors the kernel's bf16 operand
#                   quantisation so the self-check stays tight) ---------------
def _q16(x):
    """Round to bfloat16 and back to float32 (mirrors MXU operand casts)."""
    return np.asarray(jnp.asarray(x, dtype=jnp.bfloat16).astype(jnp.float32))


def sage_ref(adj_norm_q, h_q, ws_q, wn_q, b, relu):
    mean = _q16(adj_norm_q @ h_q)        # kernel casts mean to bf16 before
    out = h_q @ ws_q + mean @ wn_q + b   # the neighbour matmul
    return np.maximum(out, 0.0) if relu else out


def forward_ref(adj_l_q, adj_g_q, feat_q, loc_layers_q, glob_layers_q,
                w1, b1, bn, w2, b2):
    hl, hg = feat_q, feat_q
    nl = len(loc_layers_q)
    for i, (ws, wn, b) in enumerate(loc_layers_q):
        hl = sage_ref(adj_l_q, hl, ws, wn, b, relu=(i < nl - 1))
        if i < nl - 1:
            hl = _q16(hl)                # intermediate h is stored as bf16
    ng = len(glob_layers_q)
    for i, (ws, wn, b) in enumerate(glob_layers_q):
        hg = sage_ref(adj_g_q, hg, ws, wn, b, relu=(i < ng - 1))
        if i < ng - 1:
            hg = _q16(hg)
    h = np.concatenate([hl, hg], axis=1)
    gamma, beta, rm, rv, eps = bn
    z = h @ w1 + b1
    z = (z - rm) / np.sqrt(rv + eps) * gamma + beta
    z = np.maximum(z, 0.0)
    return z @ w2 + b2


# ------------------------------ demo / test -----------------------------------
if __name__ == "__main__":
    N = 256                      # nodes (multiple of TILE)
    IN_FEAT, N_HIDDEN, N_CLASSES = 32, 32, 8
    L_LAYERS = G_LAYERS = 2      # SAGE layers per GNN
    MLP_HIDDEN = N_HIDDEN // 2   # multiplier = 2 (residual=False)
    TILE = 128                   # full-height MXU passes; grid=(2,)
    EPS = 1e-5

    key = jax.random.PRNGKey(0)
    keys = jax.random.split(key, 40)
    kit = iter(keys)

    feat = jax.random.normal(next(kit), (N, IN_FEAT), jnp.float32)

    def rand_adj(k, p):
        a = (jax.random.uniform(k, (N, N)) < p).astype(jnp.float32)
        return a * (1.0 - jnp.eye(N, dtype=jnp.float32))     # no self-loops

    adj_local = rand_adj(next(kit), 0.05)
    adj_knn = rand_adj(next(kit), 0.10)

    # pre-normalise adjacency rows once (mean aggregation), then stream bf16
    def row_normalise(a):
        deg = jnp.sum(a, axis=1, keepdims=True)
        return a / jnp.maximum(deg, 1.0)

    adj_l_norm = row_normalise(adj_local)
    adj_g_norm = row_normalise(adj_knn)
    adj_l_bf = adj_l_norm.astype(jnp.bfloat16)
    adj_g_bf = adj_g_norm.astype(jnp.bfloat16)

    def glorot(k, shape):
        fan_in, fan_out = shape
        lim = float(np.sqrt(6.0 / (fan_in + fan_out)))
        return jax.random.uniform(k, shape, jnp.float32, -lim, lim)

    def sage_params(din, dout):
        ws = glorot(next(kit), (din, dout))
        wn = glorot(next(kit), (din, dout))
        b = jax.random.uniform(next(kit), (1, dout), jnp.float32, -0.1, 0.1)
        return ws, wn, b

    dims = [(IN_FEAT, N_HIDDEN)] + [(N_HIDDEN, N_HIDDEN)] * (L_LAYERS - 1)
    loc_layers = [sage_params(di, do) for di, do in dims]
    glob_layers = [sage_params(di, do) for di, do in dims]

    # MLP (n_mlp=2): Linear(2H, M) -> BatchNorm1d(M) -> ReLU -> Linear(M, C)
    w1 = glorot(next(kit), (2 * N_HIDDEN, MLP_HIDDEN))
    b1 = jax.random.uniform(next(kit), (1, MLP_HIDDEN), jnp.float32, -0.1, 0.1)
    gamma = jax.random.uniform(next(kit), (MLP_HIDDEN,), jnp.float32, 0.5, 1.5)
    beta = 0.1 * jax.random.normal(next(kit), (MLP_HIDDEN,), jnp.float32)
    run_mean = 0.1 * jax.random.normal(next(kit), (MLP_HIDDEN,), jnp.float32)
    run_var = jax.random.uniform(next(kit), (MLP_HIDDEN,), jnp.float32, 0.5, 1.5)
    w2 = glorot(next(kit), (MLP_HIDDEN, N_CLASSES))
    b2 = jax.random.uniform(next(kit), (1, N_CLASSES), jnp.float32, -0.1, 0.1)

    # ---- lane-pad to 128; bf16 for matmul operands, f32 elsewhere -----------
    def pad2(x, rows, cols):
        return jnp.pad(x, ((0, rows - x.shape[0]), (0, cols - x.shape[1])))

    feat_p = pad2(feat, N, LANE).astype(jnp.bfloat16)

    def pad_sage(p):
        ws, wn, b = p
        return (pad2(ws, LANE, LANE).astype(jnp.bfloat16),
                pad2(wn, LANE, LANE).astype(jnp.bfloat16),
                pad2(b, 1, LANE))                       # bias stays f32

    loc_p = [pad_sage(p) for p in loc_layers]
    glob_p = [pad_sage(p) for p in glob_layers]

    # fold BatchNorm (inference) into scale/shift; split W1 by concat halves
    bn_scale = gamma / jnp.sqrt(run_var + EPS)
    bn_shift = beta - run_mean * bn_scale
    mlp_p = (pad2(w1[:N_HIDDEN, :], LANE, LANE),        # w1_local  (f32)
             pad2(w1[N_HIDDEN:, :], LANE, LANE),        # w1_global (f32)
             pad2(b1, 1, LANE),
             pad2(bn_scale[None, :], 1, LANE),
             pad2(bn_shift[None, :], 1, LANE),
             pad2(w2, LANE, LANE),
             pad2(b2, 1, LANE))

    out_pad = local_global_gnn_forward(adj_l_bf, adj_g_bf, feat_p,
                                       loc_p, glob_p, mlp_p, tile=TILE)
    out_pad = jax.block_until_ready(out_pad)
    out = np.asarray(out_pad)[:, :N_CLASSES]

    # ----------------------------- self check --------------------------------
    # Reference uses the same bf16-rounded matmul operands as the kernel
    # (bf16 operands per perf feedback), so the remaining diff is only
    # accumulation-order noise; tolerance relaxed to 1e-2 for safety.
    loc_q = [(_q16(ws), _q16(wn), np.asarray(b)) for ws, wn, b in loc_layers]
    glob_q = [(_q16(ws), _q16(wn), np.asarray(b)) for ws, wn, b in glob_layers]
    ref = forward_ref(
        _q16(adj_l_norm), _q16(adj_g_norm), _q16(feat),
        loc_q, glob_q,
        np.asarray(w1), np.asarray(b1),
        (np.asarray(gamma), np.asarray(beta),
         np.asarray(run_mean), np.asarray(run_var), EPS),
        np.asarray(w2), np.asarray(b2))

    assert out.shape == (N, N_CLASSES)
    np.testing.assert_allclose(out, ref, rtol=1e-2, atol=1e-2)

    print("KERNEL_OK")
</pallas_src>

<mosaic_0001>
module attributes {stable_mosaic.version = 11 : i64} {
  func.func @dual_sage_shared_kernel(%arg0: i32, %arg1: memref<128x256xbf16, #tpu.memory_space<vmem>>, %arg2: memref<128x256xbf16, #tpu.memory_space<vmem>>, %arg3: memref<256x128xbf16, #tpu.memory_space<vmem>>, %arg4: memref<128x128xbf16, #tpu.memory_space<vmem>>, %arg5: memref<128x128xbf16, #tpu.memory_space<vmem>>, %arg6: memref<1x128xf32, #tpu.memory_space<vmem>>, %arg7: memref<128x128xbf16, #tpu.memory_space<vmem>>, %arg8: memref<128x128xbf16, #tpu.memory_space<vmem>>, %arg9: memref<1x128xf32, #tpu.memory_space<vmem>>, %arg10: memref<128x128xbf16, #tpu.memory_space<vmem>>, %arg11: memref<128x128xbf16, #tpu.memory_space<vmem>>) attributes {dimension_semantics = [#tpu.dimension_semantics<parallel>], iteration_bounds = array<i64: 2>, scalar_prefetch = 0 : i64, scratch_operands = 0 : i64, tpu.core_type = #tpu.core_type<tc>, window_params = [{transform_indices = @transform_0, window_bounds = array<i64: 128, 256>}, {transform_indices = @transform_1, window_bounds = array<i64: 128, 256>}, {pipeline_mode = #tpu.pipeline_mode<synchronous>, transform_indices = @transform_2, window_bounds = array<i64: 256, 128>}, {pipeline_mode = #tpu.pipeline_mode<synchronous>, transform_indices = @transform_3, window_bounds = array<i64: 128, 128>}, {pipeline_mode = #tpu.pipeline_mode<synchronous>, transform_indices = @transform_4, window_bounds = array<i64: 128, 128>}, {pipeline_mode = #tpu.pipeline_mode<synchronous>, transform_indices = @transform_5, window_bounds = array<i64: 1, 128>}, {pipeline_mode = #tpu.pipeline_mode<synchronous>, transform_indices = @transform_6, window_bounds = array<i64: 128, 128>}, {pipeline_mode = #tpu.pipeline_mode<synchronous>, transform_indices = @transform_7, window_bounds = array<i64: 128, 128>}, {pipeline_mode = #tpu.pipeline_mode<synchronous>, transform_indices = @transform_8, window_bounds = array<i64: 1, 128>}, {transform_indices = @transform_9, window_bounds = array<i64: 128, 128>}, {transform_indices = @transform_10, window_bounds = array<i64: 128, 128>}]} {
    %c128_i32 = arith.constant 128 : i32
    %0 = arith.muli %arg0, %c128_i32 : i32
    %1 = tpu.assume_multiple %0, 128 : i32
    %c0 = arith.constant 0 : index
    %c0_0 = arith.constant 0 : index
    %2 = vector.load %arg3[%c0, %c0_0] : memref<256x128xbf16, #tpu.memory_space<vmem>>, vector<256x128xbf16>
    %3 = arith.index_cast %1 : i32 to index
    %c0_1 = arith.constant 0 : index
    %4 = vector.load %arg3[%3, %c0_1] : memref<256x128xbf16, #tpu.memory_space<vmem>>, vector<128x128xbf16>
    %c0_2 = arith.constant 0 : index
    %c0_3 = arith.constant 0 : index
    %5 = vector.load %arg1[%c0_2, %c0_3] : memref<128x256xbf16, #tpu.memory_space<vmem>>, vector<128x256xbf16>
    %cst = arith.constant dense<0.000000e+00> : vector<128x128xf32>
    %6 = tpu.matmul %5, %2, %cst {dimension_numbers = #tpu.dot_dimension_numbers<[1], [0], [0], [1], [0, 0, 1, 1], [], []>} : vector<128x256xbf16>, vector<256x128xbf16>, vector<128x128xf32> -> vector<128x128xf32>
    %c0_4 = arith.constant 0 : index
    %c0_5 = arith.constant 0 : index
    %7 = vector.load %arg4[%c0_4, %c0_5] : memref<128x128xbf16, #tpu.memory_space<vmem>>, vector<128x128xbf16>
    %cst_6 = arith.constant dense<0.000000e+00> : vector<128x128xf32>
    %8 = tpu.matmul %4, %7, %cst_6 {dimension_numbers = #tpu.dot_dimension_numbers<[1], [0], [0], [1], [0, 0, 1, 1], [], []>} : vector<128x128xbf16>, vector<128x128xbf16>, vector<128x128xf32> -> vector<128x128xf32>
    %9 = arith.truncf %6 : vector<128x128xf32> to vector<128x128xbf16>
    %c0_7 = arith.constant 0 : index
    %c0_8 = arith.constant 0 : index
    %10 = vector.load %arg5[%c0_7, %c0_8] : memref<128x128xbf16, #tpu.memory_space<vmem>>, vector<128x128xbf16>
    %cst_9 = arith.constant dense<0.000000e+00> : vector<128x128xf32>
    %11 = tpu.matmul %9, %10, %cst_9 {dimension_numbers = #tpu.dot_dimension_numbers<[1], [0], [0], [1], [0, 0, 1, 1], [], []>} : vector<128x128xbf16>, vector<128x128xbf16>, vector<128x128xf32> -> vector<128x128xf32>
    %12 = arith.addf %8, %11 : vector<128x128xf32>
    %c0_10 = arith.constant 0 : index
    %c0_11 = arith.constant 0 : index
    %13 = vector.load %arg6[%c0_10, %c0_11] : memref<1x128xf32, #tpu.memory_space<vmem>>, vector<1x128xf32>
    %14 = vector.broadcast %13 : vector<1x128xf32> to vector<128x128xf32>
    %15 = arith.addf %12, %14 : vector<128x128xf32>
    %c0_12 = arith.constant 0 : index
    %c0_13 = arith.constant 0 : index
    %16 = vector.load %arg2[%c0_12, %c0_13] : memref<128x256xbf16, #tpu.memory_space<vmem>>, vector<128x256xbf16>
    %cst_14 = arith.constant dense<0.000000e+00> : vector<128x128xf32>
    %17 = tpu.matmul %16, %2, %cst_14 {dimension_numbers = #tpu.dot_dimension_numbers<[1], [0], [0], [1], [0, 0, 1, 1], [], []>} : vector<128x256xbf16>, vector<256x128xbf16>, vector<128x128xf32> -> vector<128x128xf32>
    %c0_15 = arith.constant 0 : index
    %c0_16 = arith.constant 0 : index
    %18 = vector.load %arg7[%c0_15, %c0_16] : memref<128x128xbf16, #tpu.memory_space<vmem>>, vector<128x128xbf16>
    %cst_17 = arith.constant dense<0.000000e+00> : vector<128x128xf32>
    %19 = tpu.matmul %4, %18, %cst_17 {dimension_numbers = #tpu.dot_dimension_numbers<[1], [0], [0], [1], [0, 0, 1, 1], [], []>} : vector<128x128xbf16>, vector<128x128xbf16>, vector<128x128xf32> -> vector<128x128xf32>
    %20 = arith.truncf %17 : vector<128x128xf32> to vector<128x128xbf16>
    %c0_18 = arith.constant 0 : index
    %c0_19 = arith.constant 0 : index
    %21 = vector.load %arg8[%c0_18, %c0_19] : memref<128x128xbf16, #tpu.memory_space<vmem>>, vector<128x128xbf16>
    %cst_20 = arith.constant dense<0.000000e+00> : vector<128x128xf32>
    %22 = tpu.matmul %20, %21, %cst_20 {dimension_numbers = #tpu.dot_dimension_numbers<[1], [0], [0], [1], [0, 0, 1, 1], [], []>} : vector<128x128xbf16>, vector<128x128xbf16>, vector<128x128xf32> -> vector<128x128xf32>
    %23 = arith.addf %19, %22 : vector<128x128xf32>
    %c0_21 = arith.constant 0 : index
    %c0_22 = arith.constant 0 : index
    %24 = vector.load %arg9[%c0_21, %c0_22] : memref<1x128xf32, #tpu.memory_space<vmem>>, vector<1x128xf32>
    %25 = vector.broadcast %24 : vector<1x128xf32> to vector<128x128xf32>
    %26 = arith.addf %23, %25 : vector<128x128xf32>
    %cst_23 = arith.constant 0.000000e+00 : f32
    %27 = vector.broadcast %cst_23 : f32 to vector<128x128xf32>
    %28 = arith.maximumf %15, %27 : vector<128x128xf32>
    %29 = arith.truncf %28 : vector<128x128xf32> to vector<128x128xbf16>
    %c0_24 = arith.constant 0 : index
    %c0_25 = arith.constant 0 : index
    %30 = vector.load %arg10[%c0_24, %c0_25] : memref<128x128xbf16, #tpu.memory_space<vmem>>, vector<128x128xbf16>
    tpu.vector_store %arg10[%c0_24, %c0_25], %29 {strides = array<i32>} : memref<128x128xbf16, #tpu.memory_space<vmem>>, vector<128x128xbf16>,
    %cst_26 = arith.constant 0.000000e+00 : f32
    %31 = vector.broadcast %cst_26 : f32 to vector<128x128xf32>
    %32 = arith.maximumf %26, %31 : vector<128x128xf32>
    %33 = arith.truncf %32 : vector<128x128xf32> to vector<128x128xbf16>
    %c0_27 = arith.constant 0 : index
    %c0_28 = arith.constant 0 : index
    %34 = vector.load %arg11[%c0_27, %c0_28] : memref<128x128xbf16, #tpu.memory_space<vmem>>, vector<128x128xbf16>
    tpu.vector_store %arg11[%c0_27, %c0_28], %33 {strides = array<i32>} : memref<128x128xbf16, #tpu.memory_space<vmem>>, vector<128x128xbf16>,
    return
  }
  func.func @transform_0(%arg0: i32) -> (i32, i32) {
    %c0_i32 = arith.constant 0 : i32
    %c0_i32_0 = arith.constant 0 : i32
    return %arg0, %c0_i32 : i32, i32
  }
  func.func @transform_1(%arg0: i32) -> (i32, i32) {
    %c0_i32 = arith.constant 0 : i32
    %c0_i32_0 = arith.constant 0 : i32
    return %arg0, %c0_i32 : i32, i32
  }
  func.func @transform_2(%arg0: i32) -> (i32, i32) {
    %c0_i32 = arith.constant 0 : i32
    %c0_i32_0 = arith.constant 0 : i32
    %c0_i32_1 = arith.constant 0 : i32
    return %c0_i32, %c0_i32_0 : i32, i32
  }
  func.func @transform_3(%arg0: i32) -> (i32, i32) {
    %c0_i32 = arith.constant 0 : i32
    %c0_i32_0 = arith.constant 0 : i32
    %c0_i32_1 = arith.constant 0 : i32
    return %c0_i32, %c0_i32_0 : i32, i32
  }
  func.func @transform_4(%arg0: i32) -> (i32, i32) {
    %c0_i32 = arith.constant 0 : i32
    %c0_i32_0 = arith.constant 0 : i32
    %c0_i32_1 = arith.constant 0 : i32
    return %c0_i32, %c0_i32_0 : i32, i32
  }
  func.func @transform_5(%arg0: i32) -> (i32, i32) {
    %c0_i32 = arith.constant 0 : i32
    %c0_i32_0 = arith.constant 0 : i32
    %c0_i32_1 = arith.constant 0 : i32
    return %c0_i32, %c0_i32_0 : i32, i32
  }
  func.func @transform_6(%arg0: i32) -> (i32, i32) {
    %c0_i32 = arith.constant 0 : i32
    %c0_i32_0 = arith.constant 0 : i32
    %c0_i32_1 = arith.constant 0 : i32
    return %c0_i32, %c0_i32_0 : i32, i32
  }
  func.func @transform_7(%arg0: i32) -> (i32, i32) {
    %c0_i32 = arith.constant 0 : i32
    %c0_i32_0 = arith.constant 0 : i32
    %c0_i32_1 = arith.constant 0 : i32
    return %c0_i32, %c0_i32_0 : i32, i32
  }
  func.func @transform_8(%arg0: i32) -> (i32, i32) {
    %c0_i32 = arith.constant 0 : i32
    %c0_i32_0 = arith.constant 0 : i32
    %c0_i32_1 = arith.constant 0 : i32
    return %c0_i32, %c0_i32_0 : i32, i32
  }
  func.func @transform_9(%arg0: i32) -> (i32, i32) {
    %c0_i32 = arith.constant 0 : i32
    %c0_i32_0 = arith.constant 0 : i32
    return %arg0, %c0_i32 : i32, i32
  }
  func.func @transform_10(%arg0: i32) -> (i32, i32) {
    %c0_i32 = arith.constant 0 : i32
    %c0_i32_0 = arith.constant 0 : i32
    return %arg0, %c0_i32 : i32, i32
  }
}

</mosaic_0001>

<bundles_post_ra>
// kernel: tpu_custom_call.1
= control target key start
LH: loop header
LB: loop body
LE: loop exit
PB: predicated region body
PF: predicated region fallthrough
CT: control target
= control target key end

     0   :  { %s3968_s0 = inlined_call_operand.hbm [shape: bf16[256,256], index: 0, kind: input, shape index: {}]   ;;  %s3969_s1 = inlined_call_operand.hbm [shape: bf16[256,256], index: 1, kind: input, shape index: {}]   ;;  %s3970_s2 = inlined_call_operand.hbm [shape: bf16[256,128], index: 2, kind: input, shape index: {}]   ;;  %s3971_s3 = inlined_call_operand.hbm [shape: bf16[128,128], index: 3, kind: input, shape index: {}]   ;;  %s3972_s4 = inlined_call_operand.hbm [shape: bf16[128,128], index: 4, kind: input, shape index: {}]   ;;  %s3973_s5 = inlined_call_operand.vmem [shape: f32[1,128], index: 5, kind: input, shape index: {}]   ;;  %s3974_s6 = inlined_call_operand.hbm [shape: bf16[128,128], index: 6, kind: input, shape index: {}]   ;;  %s3975_s7 = inlined_call_operand.hbm [shape: bf16[128,128], index: 7, kind: input, shape index: {}]   ;;  %s3976_s8 = inlined_call_operand.vmem [shape: f32[1,128], index: 8, kind: input, shape index: {}]   ;;  %s3977_s9 = inlined_call_operand.hbm [shape: bf16[256,128], index: 9, kind: output, shape index: {0}]   ;;  %s3978_s10 = inlined_call_operand.hbm [shape: bf16[256,128], index: 10, kind: output, shape index: {1}]  }
   0x1   :  { %3984 = sst [smem:[#allocation24_spill]] %s3968_s0 }
   0x2   :  { %3985 = sst [smem:[#allocation25_spill]] %s3970_s2 }
   0x3   :  { %3986 = sst [smem:[#allocation26_spill]] %s3971_s3 }
   0x4   :  { %3987 = sst [smem:[#allocation27_spill]] %s3972_s4 }
   0x5   :  { %3988 = sst [smem:[#allocation28_spill]] %s3974_s6 }
   0x6   :  { %3989 = sst [smem:[#allocation29_spill]] %s3976_s8 }
   0x7   :  { %3990 = sst [smem:[#allocation30_spill]] %s3978_s10 }
   0x8   :  { %16 = vsyncpa [#allocation3], 0 }
   0x9   :  { %18 = vsyncpa [#allocation3 + $0x1], 0 }
   0xa   :  { %19 = vsyncpa [#allocation6], 0 }
   0xb   :  { %21 = vsyncpa [#allocation6 + $0x1], 0 }
   0xc   :  { %22 = vsyncpa [#allocation9], 0 }
   0xd   :  { %23 = vsyncpa [#allocation12], 0 }
   0xe   :  { %24 = vsyncpa [#allocation4], 0 }
   0xf   :  { %26 = vsyncpa [#allocation4 + $0x1], 0 }
  0x10   :  { %27 = vsyncpa [#allocation16], 0 }
  0x11   :  { %29 = vsyncpa [#allocation16 + $0x1], 0  ;;  %s3446_s13 = smov 0   ;;  %s3448_s14 = smov 0  }
  0x12   :  { %s3450_s15 = smov 0   ;;  %s3452_s16 = smov 0  }
  0x13 LB: > { %s3376_s17 = smov [#allocation7]   ;;  %s3467_s19 = sadd.s32 4294967295, %s3374_s16   ;;  %s3374_s16 = sphi %s3452_s16, %s4020_s16   ;;  %s3370_s15 = sphi %s3450_s15, %s4019_s15   ;;  %s3366_s14 = sphi %s3448_s14, %s4018_s14   ;;  %s3362_s13 = sphi %s3446_s13, %s4017_s13  }
  0x14   : > { %s303_s18 = sshll.u32 %s3376_s17, 4  ;;  %p2202_p0 = scmp.ge.s32.totalorder %s3374_s16, 1  ;;  %s3472_s18 = int_to_ptr.vmem [resolvable:$true] %s303_s18 }
  0x15   : > { %p3980_p1 = scmp.eq.s32.totalorder %s3467_s19, 0  ;;  %p291_p2 = scmp.lt.s32.totalorder %s3374_s16, 3 }
  0x16   : > { %s3377_s21 = smov [#allocation8]   ;;  %s3378_s24 = smov [#allocation11]  }
  0x17   : > { %p3474_p3 = pnand %p2202_p0, %p291_p2  ;;  %s316_s22 = sshll.u32 %s3377_s21, 4  ;;  %s3487_s22 = int_to_ptr.vmem [resolvable:$true] %s316_s22 }
  0x18   : > { %s345_s25 = sshll.u32 %s3378_s24, 4  ;;  %s3993_s2 = sld [smem:[#allocation25_spill]]  ;;  %s3489_s25 = int_to_ptr.vmem [resolvable:$true] %s345_s25 }
  0x19   : > { %s3991_s20 = scalar_select %p3474_p3, 1, 0 }
  0x1a   : > { %p2871_p5 = pneg %p3474_p3 }
  0x1c   : > { %p3483_p6 = pnand %p2871_p5, %p3980_p1 }
  0x1e   : > { %s3060_s28 = scalar_lea.hbm %s3993_s2, 2048  ;;  %p3499_p8 = pneg %p3483_p6 }
  0x1f   : > { %p3061_p7 = scmp.ne.s32.totalorder %s3993_s2, %s3060_s28  ;;  %p3067_p11 = scmp.lt.u32.totalorder %s3060_s28, %s3993_s2 }
  0x21   : > { %p3063_p9 = pnand %p3499_p8, %p3061_p7 }
  0x23   : > { %p3064_p10 = pneg %p3063_p9 }
  0x25   : > { %p3069_p12 = pnand %p3067_p11, %p3064_p10 }
  0x27   : > { %3072 = shalt.err (!%p3069_p12)
}
  0x28   : > { %s3073_s21 = scalar_lea.vmem %s3472_s18, 2048  ;;  %p3081_p5 = scmp.lt.s32.totalorder %s3472_s18, %s3472_s18 }
  0x29   : > { %p3074_p13 = scmp.ne.s32.totalorder %s3472_s18, %s3073_s21  ;;  %p3082_p4 = scmp.lt.s32.totalorder %s3073_s21, %s3073_s21 }
  0x2b   : > { %p3076_p0 = pnand %p3074_p13, %p3499_p8  ;;  %p3083_p7 = por %p3082_p4, %p3081_p5 }
  0x2d   : > { %p3077_p2 = pneg %p3076_p0 }
  0x2f   : > { %p3084_p9 = pnand %p3083_p7, %p3077_p2 }
  0x31   : > { %3087 = shalt.err (!%p3084_p9)
}
  0x32   : > { %s3379_s24 = smov 64   ;;  %s3380_s26 = smov 4  }
  0x33   : > { %2874 = dma.hbm_to_vmem [thread:$0]  (!%p3483_p6), %s3993_s2, 2048, %s3472_s18, [#allocation6], %s3379_s24, %s3379_s24, %s3380_s26  }
  0x34   : > { %s3995_s3 = sld [smem:[#allocation26_spill]] }
  0x3a   : > { %s3088_s12 = scalar_lea.hbm %s3995_s3, 1024 }
  0x3b   : > { %p3089_p4 = scmp.ne.s32.totalorder %s3995_s3, %s3088_s12  ;;  %p3095_p12 = scmp.lt.u32.totalorder %s3088_s12, %s3995_s3 }
  0x3d   : > { %p3091_p10 = pnand %p3089_p4, %p3499_p8 }
  0x3f   : > { %p3092_p11 = pneg %p3091_p10 }
  0x41   : > { %p3097_p13 = pnand %p3095_p12, %p3092_p11 }
  0x43   : > { %3100 = shalt.err (!%p3097_p13)
}
  0x44   : > { %s3101_s18 = scalar_lea.vmem %s3487_s22, 1024  ;;  %p3109_p7 = scmp.lt.s32.totalorder %s3487_s22, %s3487_s22 }
  0x45   : > { %p3102_p0 = scmp.ne.s32.totalorder %s3487_s22, %s3101_s18  ;;  %p3110_p9 = scmp.lt.s32.totalorder %s3101_s18, %s3101_s18 }
  0x47   : > { %p3104_p2 = pnand %p3102_p0, %p3499_p8  ;;  %p3111_p4 = por %p3110_p9, %p3109_p7 }
  0x49   : > { %p3105_p5 = pneg %p3104_p2 }
  0x4b   : > { %p3112_p10 = pnand %p3111_p4, %p3105_p5 }
  0x4d   : > { %3115 = shalt.err (!%p3112_p10)
}
  0x4e   : > { %2877 = dma.hbm_to_vmem [thread:$0]  (!%p3483_p6), %s3995_s3, 1024, %s3487_s22, [#allocation9], %s3379_s24, %s3379_s24, %s3380_s26  }
  0x4f   : > { %s3996_s6 = sld [smem:[#allocation28_spill]] }
  0x55   : > { %s3116_s29 = scalar_lea.hbm %s3996_s6, 1024 }
  0x56   : > { %p3117_p11 = scmp.ne.s32.totalorder %s3996_s6, %s3116_s29  ;;  %p3123_p0 = scmp.lt.u32.totalorder %s3116_s29, %s3996_s6 }
  0x58   : > { %p3119_p12 = pnand %p3117_p11, %p3499_p8 }
  0x5a   : > { %p3120_p13 = pneg %p3119_p12 }
  0x5c   : > { %p3125_p2 = pnand %p3123_p0, %p3120_p13 }
  0x5e   : > { %3128 = shalt.err (!%p3125_p2)
}
  0x5f   : > { %s3129_s22 = scalar_lea.vmem %s3489_s25, 1024  ;;  %p3137_p4 = scmp.lt.s32.totalorder %s3489_s25, %s3489_s25 }
  0x60   : > { %p3130_p5 = scmp.ne.s32.totalorder %s3489_s25, %s3129_s22  ;;  %p3138_p10 = scmp.lt.s32.totalorder %s3129_s22, %s3129_s22 }
  0x62   : > { %p3132_p7 = pnand %p3130_p5, %p3499_p8  ;;  %p3139_p11 = por %p3138_p10, %p3137_p4 }
  0x64   : > { %p3133_p9 = pneg %p3132_p7 }
  0x66   : > { %p3140_p12 = pnand %p3139_p11, %p3133_p9 }
  0x68   : > { %3143 = shalt.err (!%p3140_p12)
}
  0x69   : > { %2883 = dma.hbm_to_vmem [thread:$0]  (!%p3483_p6), %s3996_s6, 1024, %s3489_s25, [#allocation12], %s3379_s24, %s3379_s24, %s3380_s26  }
  0x6a   : > { %s3381_s10 = smov [#allocation10]   ;;  %s3382_s28 = smov [#allocation13]  }
  0x6b   : > { %s329_s27 = sshll.u32 %s3381_s10, 4  ;;  %s358_s29 = sshll.u32 %s3382_s28, 4  ;;  %s330_s27 = int_to_ptr.vmem [resolvable:$true] %s329_s27  ;;  %s359_s29 = int_to_ptr.vmem [resolvable:$true] %s358_s29 }
  0x6c   : > { %s3997_s4 = sld [smem:[#allocation27_spill]] }
  0x72   : > { %s3144_s17 = scalar_lea.hbm %s3997_s4, 1024 }
  0x73   : > { %p3145_p13 = scmp.ne.s32.totalorder %s3997_s4, %s3144_s17  ;;  %p3151_p5 = scmp.lt.u32.totalorder %s3144_s17, %s3997_s4 }
  0x75   : > { %p3147_p0 = pnand %p3145_p13, %p3499_p8 }
  0x77   : > { %p3148_p2 = pneg %p3147_p0 }
  0x79   : > { %p3153_p7 = pnand %p3151_p5, %p3148_p2 }
  0x7b   : > { %3156 = shalt.err (!%p3153_p7)
}
  0x7c   : > { %s3157_s25 = scalar_lea.vmem %s330_s27, 1024  ;;  %p3165_p11 = scmp.lt.s32.totalorder %s330_s27, %s330_s27 }
  0x7d   : > { %p3158_p9 = scmp.ne.s32.totalorder %s330_s27, %s3157_s25  ;;  %p3166_p12 = scmp.lt.s32.totalorder %s3157_s25, %s3157_s25 }
  0x7f   : > { %p3160_p4 = pnand %p3158_p9, %p3499_p8  ;;  %p3167_p1 = por %p3166_p12, %p3165_p11 }
  0x81   : > { %p3161_p10 = pneg %p3160_p4 }
  0x83   : > { %p3168_p3 = pnand %p3167_p1, %p3161_p10 }
  0x85   : > { %3171 = shalt.err (!%p3168_p3)
}
  0x86   : > { %2880 = dma.hbm_to_vmem [thread:$0]  (!%p3483_p6), %s3997_s4, 1024, %s330_s27, [#allocation9], %s3379_s24, %s3379_s24, %s3380_s26  }
  0x87   : > { %s3172_s30 = scalar_lea.hbm %s3975_s7, 1024 }
  0x88   : > { %p3173_p1 = scmp.ne.s32.totalorder %s3975_s7, %s3172_s30  ;;  %p3179_p0 = scmp.lt.u32.totalorder %s3172_s30, %s3975_s7 }
  0x8a   : > { %p3175_p3 = pnand %p3173_p1, %p3499_p8 }
  0x8c   : > { %p3176_p13 = pneg %p3175_p3 }
  0x8e   : > { %p3181_p2 = pnand %p3179_p0, %p3176_p13 }
  0x90   : > { %3184 = shalt.err (!%p3181_p2)
}
  0x91   : > { %s3185_s18 = scalar_lea.vmem %s359_s29, 1024  ;;  %p3193_p4 = scmp.lt.s32.totalorder %s359_s29, %s359_s29 }
  0x92   : > { %p3186_p5 = scmp.ne.s32.totalorder %s359_s29, %s3185_s18  ;;  %p3194_p10 = scmp.lt.s32.totalorder %s3185_s18, %s3185_s18 }
  0x94   : > { %p3188_p7 = pnand %p3186_p5, %p3499_p8  ;;  %p3195_p11 = por %p3194_p10, %p3193_p4 }
  0x96   : > { %p3189_p9 = pneg %p3188_p7 }
  0x98   : > { %p3196_p12 = pnand %p3195_p11, %p3189_p9 }
  0x9a   : > { %3199 = shalt.err (!%p3196_p12)
}
  0x9b   : > { %2886 = dma.hbm_to_vmem [thread:$0]  (!%p3483_p6), %s3975_s7, 1024, %s359_s29, [#allocation12], %s3379_s24, %s3379_s24, %s3380_s26  }
  0x9c   : > { %s2201_s23 = sadd.s32 4294967294, %s3374_s16   ;;  %s3619_s11 = sadd.s32 1, %s3374_s16  }
  0x9d   : > { %s42_s2 = sadd.s32 1, %s3370_s15  ;;  %s39_s8 = ssub.s32 %s3374_s16, %s3619_s11 }
  0x9e   : > { %p49_p8 = scmp.ne.s32.totalorder %s3370_s15, %s3366_s14  ;;  %p40_p1 = scmp.eq.s32.totalorder %s39_s8, 0 }
  0x9f   : > { %p50_p3 = scmp.eq.s32.totalorder %s3374_s16, 0  ;;  %p55_p13 = scmp.ne.s32.totalorder %s3366_s14, %s3362_s13 }
  0xa0   : > { %p252_p0 = scmp.eq.s32.totalorder %s3467_s19, 1  ;;  %p3998_p5 = scmp.eq.s32.totalorder %s3467_s19, 0 }
  0xa1   : > { %s3631_s10 = scalar_select %p40_p1, %s3370_s15, %s42_s2  }
  0xa2   : > { %p51_p2 = por %p50_p3, %p49_p8  ;;  %p3635_p7 = por %p3998_p5, %p55_p13 }
  0xa3   : > { %p3639_p6 = por %p252_p0, %p49_p8  ;;  %p258_p9 = scmp.eq.s32.totalorder %s2201_s23, 1 }
  0xa4   : > { %p2906_p4 = scmp.lt.s32.totalorder %s3374_s16, 2  ;;  %s375_s29 = sand.u32 1, %s3370_s15  }
  0xa5   : > { %s4000_s26 = scalar_select %p3639_p6, 1, 0 }
  0xa6   : > { %p3645_p10 = por %p258_p9, %p55_p13  ;;  %s3649_s30 = sshll.u32 %s375_s29, 7 }
  0xa7   : > { %s3982_s12 = sshll.u32 %s3374_s16, 11  ;;  %s4002_s0 = sld [smem:[#allocation24_spill]] }
  0xa8   : > { %s4001_s28 = scalar_select %p3645_p10, 1, 0 }
  0xa9   : > { %s379_s18 = scalar_lea.vmem [#allocation2], %s3649_s30  ;;  %p3660_p11 = pnand %p2906_p4, %p51_p2 }
  0xaa   : > { %s387_s27 = sshll.u32 %s379_s18, 4  ;;  %s3666_s23 = scalar_lea.sflag [#allocation3], %s375_s29  ;;  %s3664_s27 = int_to_ptr.vmem [resolvable:$true] %s387_s27 }
  0xab   : > { %p3202_p8 = pneg %p3660_p11 }
  0xad   : > { %s3657_s22 = scalar_lea.hbm %s4002_s0, %s3982_s12  ;;  %s3205_s21 = scalar_lea.hbm %s4002_s0, 4096 }
  0xae   : > { %s3200_s2 = scalar_lea.hbm %s3657_s22, 2048  ;;  %p3206_p13 = scmp.lt.u32.totalorder %s3657_s22, %s4002_s0 }
  0xaf   : > { %p3201_p12 = scmp.ne.s32.totalorder %s3657_s22, %s3200_s2  ;;  %p3207_p0 = scmp.lt.u32.totalorder %s3205_s21, %s3200_s2 }
  0xb0   : > { %p3209_p5 = scmp.lt.u32.totalorder %s3200_s2, %s3657_s22 }
  0xb1   : > { %p3203_p1 = pnand %p3202_p8, %p3201_p12  ;;  %p3208_p2 = por %p3207_p0, %p3206_p13 }
  0xb3   : > { %p3204_p3 = pneg %p3203_p1  ;;  %p3210_p9 = por %p3209_p5, %p3208_p2 }
  0xb5   : > { %p3211_p4 = pnand %p3210_p9, %p3204_p3 }
  0xb7   : > { %3214 = shalt.err (!%p3211_p4)
}
  0xb8   : > { %s3215_s29 = scalar_lea.vmem %s3664_s27, 2048  ;;  %s3383_s8 = smov [#allocation2]  }
  0xb9   : > { %p3216_p12 = scmp.ne.s32.totalorder %s3664_s27, %s3215_s29  ;;  %s3220_s17 = sshll.u32 %s3383_s8, 4  ;;  %s3221_s17 = int_to_ptr.vmem [resolvable:$false] %s3220_s17 }
  0xba   : > { %s3222_s12 = scalar_lea.vmem %s3221_s17, 4096  ;;  %p3223_p6 = scmp.lt.s32.totalorder %s3664_s27, %s3221_s17 }
  0xbb   : > { %p3218_p1 = pnand %p3216_p12, %p3202_p8  ;;  %p3224_p13 = scmp.lt.s32.totalorder %s3222_s12, %s3215_s29 }
  0xbd   : > { %p3219_p10 = pneg %p3218_p1  ;;  %p3225_p0 = por %p3224_p13, %p3223_p6 }
  0xbf   : > { %p3226_p2 = pnand %p3225_p0, %p3219_p10 }
  0xc1   : > { %3229 = shalt.err (!%p3226_p2)
}
  0xc2   : > { %s3384_s2 = smov 128   ;;  %s3385_s21 = smov 8  }
  0xc3   : > { %2890 = dma.hbm_to_vmem [thread:$0]  (!%p3660_p11), %s3657_s22, 2048, %s3664_s27, %s3666_s23, %s3384_s2, %s3384_s2, %s3385_s21  }
  0xc4   : > { %s4004_s18 = sshll.u32 %s3374_s16, 11  ;;  %s401_s12 = scalar_lea.vmem [#allocation5], %s3649_s30 }
  0xc5   : > { %s3702_s17 = scalar_lea.hbm %s3969_s1, %s4004_s18  ;;  %s409_s0 = sshll.u32 %s401_s12, 4  ;;  %s3706_s0 = int_to_ptr.vmem [resolvable:$true] %s409_s0 }
  0xc6   : > { %s397_s3 = sand.u32 1, %s3374_s16   ;;  %s3230_s6 = scalar_lea.hbm %s3702_s17, 2048 }
  0xc7   : > { %s3708_s4 = scalar_lea.sflag [#allocation6], %s397_s3  ;;  %p3231_p6 = scmp.ne.s32.totalorder %s3702_s17, %s3230_s6 }
  0xc8   : > { %s3235_s23 = scalar_lea.hbm %s3969_s1, 4096  ;;  %p3236_p5 = scmp.lt.u32.totalorder %s3702_s17, %s3969_s1 }
  0xc9   : > { %p3233_p10 = pnand %p3231_p6, %p3202_p8  ;;  %p3237_p9 = scmp.lt.u32.totalorder %s3235_s23, %s3230_s6 }
  0xca   : > { %p3239_p12 = scmp.lt.u32.totalorder %s3230_s6, %s3702_s17 }
  0xcb   : > { %p3234_p3 = pneg %p3233_p10  ;;  %p3238_p4 = por %p3237_p9, %p3236_p5 }
  0xcd   : > { %p3240_p1 = por %p3239_p12, %p3238_p4 }
  0xcf   : > { %p3241_p13 = pnand %p3240_p1, %p3234_p3 }
  0xd1   : > { %3244 = shalt.err (!%p3241_p13)
}
  0xd2   : > { %s3245_s3 = scalar_lea.vmem %s3706_s0, 2048  ;;  %s3386_s30 = smov [#allocation5]  }
  0xd3   : > { %p3246_p0 = scmp.ne.s32.totalorder %s3706_s0, %s3245_s3  ;;  %s3250_s8 = sshll.u32 %s3386_s30, 4  ;;  %s3251_s8 = int_to_ptr.vmem [resolvable:$false] %s3250_s8 }
  0xd4   : > { %s3252_s12 = scalar_lea.vmem %s3251_s8, 4096  ;;  %p3253_p10 = scmp.lt.s32.totalorder %s3706_s0, %s3251_s8 }
  0xd5   : > { %p3248_p2 = pnand %p3246_p0, %p3202_p8  ;;  %p3254_p5 = scmp.lt.s32.totalorder %s3252_s12, %s3245_s3 }
  0xd7   : > { %p3249_p6 = pneg %p3248_p2  ;;  %p3255_p9 = por %p3254_p5, %p3253_p10 }
  0xd9   : > { %p3256_p4 = pnand %p3255_p9, %p3249_p6 }
  0xdb   : > { %3259 = shalt.err (!%p3256_p4)
}
  0xdc   : > { %2893 = dma.hbm_to_vmem [thread:$0]  (!%p3660_p11), %s3702_s17, 2048, %s3706_s0, %s3708_s4, %s3384_s2, %s3384_s2, %s3385_s21  }
  0xdd   : > { %p4005_p8 = scmp.ne.s32.totalorder %s3991_s20, 0 }
  0xde   : > { %s3740_s6 = sand.u32 (!%p4005_p8), 1, %s3366_s14  }
  0xdf   : > { %421 = sbr.rel (%p4005_p8) target bundleno = 883 (0x373), region = 56  ;;  %s2218_s22 = sshll.u32 (!%p4005_p8), %s3740_s6, 7 }
  0xe0   : > { %s424_s27 = scalar_lea.sflag (!%p4005_p8), [#allocation3], %s3740_s6  ;;  %s3744_s23 = scalar_lea.vmem (!%p4005_p8), [#allocation2], %s2218_s22 }
  0xe6   : > { %3333 = dma.done.wait (%p3635_p7), %s424_s27, 2048  }
  0xe7   : > { %3335 = vsyncadd (%p3635_p7), %s424_s27, 4294965248  ;;  %s432_s0 = sand.u32 1, %s3467_s19   ;;  %s3751_s20 = scalar_lea.vmem [#allocation5], %s2218_s22 }
  0xe8   : > { %s433_s4 = scalar_lea.sflag [#allocation6], %s432_s0 }
  0xe9   : > { %3337 = dma.done.wait (%p3635_p7), %s433_s4, 2048  }
  0xea   : > { %3339 = vsyncadd (%p3635_p7), %s433_s4, 4294965248  ;;  %p4006_p11 = scmp.eq.s32.totalorder %s3467_s19, 0 }
  0xec   : > { %3341 = dma.done.wait (%p4006_p11), [#allocation6], 2048   ;;  %p4007_p3 = pmov %p4006_p11 }
  0xee   : > { %3343 = vsyncadd (%p4007_p3), [#allocation6], 4294965248  ;;  %p4008_p12 = pmov %p4007_p3 }
  0xef   : > { %p4009_p1 = pmov %p4007_p3 }
  0xf0   : > { %3345 = dma.done.wait (%p4008_p12), [#allocation9], 2048  }
  0xf1   : > { %3347 = vsyncadd (%p4009_p1), [#allocation9], 4294965248  ;;  %p4010_p13 = pmov %p4009_p1 }
  0xf2   : > { %p4011_p0 = pmov %p4009_p1 }
  0xf3   : > { %3349 = dma.done.wait (%p4010_p13), [#allocation12], 2048  }
  0xf4   : > { %3351 = vsyncadd (%p4011_p0), [#allocation12], 4294965248  ;;  %v2956_v0 = vld [vmem:[#allocation7 + $0x40] sm:$0xff]   ;;  %v2958_v2 = vld [vmem:[#allocation7 + $0x48] sm:$0xff]   ;;  %s2227_s24 = sshll.u32 %s3467_s19, 7  ;;  %s2225_s29 = sshll.u32 %s3740_s6, 6 }
  0xf5   : > { %v2957_v1 = vld [vmem:[#allocation7] sm:$0xff]   ;;  %2491 = vmatprep.subr.bf16.mxu0 %v2956_v0  ;;  %v2959_v3 = vld [vmem:[#allocation7 + $0x8] sm:$0xff]   ;;  %v2960_v4 = vld [vmem:[#allocation7 + $0x50] sm:$0xff]   ;;  %s541_s25 = sshra.s32 %s2227_s24, 3  ;;  %s3850_s3 = scalar_lea.vmem [#allocation14], %s2225_s29 }
  0xf6   : > { %2492 = vmatpush3.bf16.msra.mxu0 %v2957_v1  ;;  %v2961_v5 = vld [vmem:[#allocation7 + $0x10] sm:$0xff]   ;;  %v2962_v6 = vld [vmem:[#allocation7 + $0x58] sm:$0xff]   ;;  %v2964_v8 = vld [vmem:[#allocation7 + $0x60] sm:$0xff]   ;;  %s2228_s2 = sshll.u32 %s541_s25, 2  ;;  %s2008_s30 = sshll.u32 %s3850_s3, 4  ;;  %s3860_s30 = int_to_ptr.vmem [resolvable:$true] %s2008_s30 }
  0xf7   : > { %2493 = vmatprep.subr.bf16.mxu0 %v2958_v2  ;;  %v2963_v7 = vld [vmem:[#allocation7 + $0x18] sm:$0xff]   ;;  %v2965_v9 = vld [vmem:[#allocation7 + $0x20] sm:$0xff]   ;;  %v2966_v10 = vld [vmem:[#allocation7 + $0x68] sm:$0xff]   ;;  %s3802_s21 = scalar_lea.vmem [#allocation7], %s2228_s2  ;;  %s2395_s8 = sshll.u32 %s3467_s19, 10 }
  0xf8   : > { %v2974_v11 = vld [vmem:[%s3744_s23 + $0x4] ss:$8 sps:$4 sm:$0xff]   ;;  %v2968_v13 = vld [vmem:[#allocation7 + $0x70] sm:$0xff]   ;;  %v2970_v15 = vld [vmem:[#allocation7 + $0x78] sm:$0xff]   ;;  %s3867_s27 = scalar_lea.hbm %s3977_s9, %s2395_s8  ;;  %s3260_s0 = scalar_lea.vmem %s3860_s30, 1024 }
  0xf9   : > { %v2967_v12 = vld [vmem:[#allocation7 + $0x28] sm:$0xff]   ;;  %785 = vmatprep.mubr.bf16.mxu0 %v2974_v11  ;;  %v2969_v14 = vld [vmem:[#allocation7 + $0x30] sm:$0xff]   ;;  %v2971_v16 = vld [vmem:[#allocation7 + $0x38] sm:$0xff]   ;;  %p3261_p7 = scmp.ne.s32.totalorder %s3860_s30, %s3260_s0  ;;  %p4012_p2 = scmp.ne.s32.totalorder %s4000_s26, 0 }
  0xfa   : > { %2494 = vmatpush3.bf16.msra.mxu0 %v2959_v3  ;;  %v2972_v17 = vld [vmem:[%s3744_s23] ss:$8 sps:$4 sm:$0xff]   ;;  %v2975_v18 = vld [vmem:[%s3744_s23 + $0x14] ss:$8 sps:$4 sm:$0xff]   ;;  %v2977_v19 = vld [vmem:[%s3744_s23 + $0x10] ss:$8 sps:$4 sm:$0xff]  }
  0xfb   : > { %2495 = vmatprep.subr.bf16.mxu0 %v2960_v4  ;;  %v2978_v20 = vld [vmem:[%s3744_s23 + $0x24] ss:$8 sps:$4 sm:$0xff]   ;;  %v3022_v23 = vld [vmem:[#allocation10 + $0x10] sm:$0xff]   ;;  %v2980_v24 = vld [vmem:[%s3744_s23 + $0x20] ss:$8 sps:$4 sm:$0xff]   ;;  %p3262_p6 = pnand %p3261_p7, %p4012_p2  ;;  %s3387_s4 = smov [#allocation14]  }
  0xfc   : > { %v3020_v21 = vld [vmem:[#allocation10] sm:$0xff]   ;;  %v3021_v22 = vld [vmem:[#allocation10 + $0x8] sm:$0xff]   ;;  %v3023_v25 = vld [vmem:[#allocation10 + $0x18] sm:$0xff]  }
  0xfd   : > { %2683 = vmatprep.subr.bf16.mxu1 %v3020_v21  ;;  %v2981_v26 = vld [vmem:[%s3744_s23 + $0x34] ss:$8 sps:$4 sm:$0xff]   ;;  %v2983_v27 = vld [vmem:[%s3744_s23 + $0x30] ss:$8 sps:$4 sm:$0xff]   ;;  %v2984_v28 = vld [vmem:[%s3744_s23 + $0x44] ss:$8 sps:$4 sm:$0xff]   ;;  %p3263_p10 = pneg %p3262_p6 }
  0xfe   : > { %2496 = vmatpush3.bf16.msra.mxu0 %v2961_v5  ;;  %2684 = vmatpush3.bf16.msra.mxu1 %v3020_v21  ;;  %v2986_v29 = vld [vmem:[%s3744_s23 + $0x40] ss:$8 sps:$4 sm:$0xff]   ;;  %v2987_v30 = vld [vmem:[%s3744_s23 + $0x54] ss:$8 sps:$4 sm:$0xff]   ;;  %v2989_v31 = vld [vmem:[%s3744_s23 + $0x50] ss:$8 sps:$4 sm:$0xff]  }
  0xff   : > { %2497 = vmatprep.subr.bf16.mxu0 %v2962_v6  ;;  %2685 = vmatprep.subr.bf16.mxu1 %v3021_v22  ;;  %v2990_v32 = vld [vmem:[%s3744_s23 + $0x64] ss:$8 sps:$4 sm:$0xff]   ;;  %v2992_v33 = vld [vmem:[%s3744_s23 + $0x60] ss:$8 sps:$4 sm:$0xff]   ;;  %v2993_v34 = vld [vmem:[%s3744_s23 + $0x74] ss:$8 sps:$4 sm:$0xff]  }
 0x100   : > { %v2995_v35 = vld [vmem:[%s3744_s23 + $0x70] ss:$8 sps:$4 sm:$0xff]   ;;  %v2998_v36 = vld [vmem:[%s3751_s20 + $0x4] ss:$8 sps:$4 sm:$0xff]   ;;  %v2996_v37 = vld [vmem:[%s3751_s20] ss:$8 sps:$4 sm:$0xff]  }
 0x101   : > { %v2999_v38 = vld [vmem:[%s3751_s20 + $0x14] ss:$8 sps:$4 sm:$0xff]   ;;  %v3001_v39 = vld [vmem:[%s3751_s20 + $0x10] ss:$8 sps:$4 sm:$0xff]   ;;  %v3002_v40 = vld [vmem:[%s3751_s20 + $0x24] ss:$8 sps:$4 sm:$0xff]  }
 0x102   : > { %2498 = vmatpush3.bf16.msra.mxu0 %v2963_v7  ;;  %2686 = vmatpush3.bf16.msra.mxu1 %v3021_v22  ;;  %v3004_v41 = vld [vmem:[%s3751_s20 + $0x20] ss:$8 sps:$4 sm:$0xff]   ;;  %v3005_v42 = vld [vmem:[%s3751_s20 + $0x34] ss:$8 sps:$4 sm:$0xff]   ;;  %v3007_v44 = vld [vmem:[%s3751_s20 + $0x30] ss:$8 sps:$4 sm:$0xff]  }
 0x103   : > { %2499 = vmatprep.subr.bf16.mxu0 %v2964_v8  ;;  %2687 = vmatprep.subr.bf16.mxu1 %v3022_v23  ;;  %v3024_v43 = vld [vmem:[#allocation10 + $0x20] sm:$0xff]   ;;  %v3025_v46 = vld [vmem:[#allocation10 + $0x28] sm:$0xff]   ;;  %v3026_v47 = vld [vmem:[#allocation10 + $0x30] sm:$0xff]   ;;  %s1990_s23 = scalar_lea.sflag [#allocation4], %s3740_s6 }
 0x104   : > { %v3008_v45 = vld [vmem:[%s3751_s20 + $0x44] ss:$8 sps:$4 sm:$0xff]   ;;  %v3010_v48 = vld [vmem:[%s3751_s20 + $0x40] ss:$8 sps:$4 sm:$0xff]   ;;  %v3011_v49 = vld [vmem:[%s3751_s20 + $0x54] ss:$8 sps:$4 sm:$0xff]  }
 0x105   : > { %v3027_v50 = vld [vmem:[#allocation10 + $0x38] sm:$0xff]   ;;  %v3014_v52 = vld [vmem:[%s3751_s20 + $0x64] ss:$8 sps:$4 sm:$0xff]   ;;  %v3016_v53 = vld [vmem:[%s3751_s20 + $0x60] ss:$8 sps:$4 sm:$0xff]  }
 0x106   : > { %2500 = vmatpush3.bf16.msra.mxu0 %v2965_v9  ;;  %2688 = vmatpush3.bf16.msra.mxu1 %v3022_v23  ;;  %v3013_v51 = vld [vmem:[%s3751_s20 + $0x50] ss:$8 sps:$4 sm:$0xff]   ;;  %v3017_v54 = vld [vmem:[%s3751_s20 + $0x74] ss:$8 sps:$4 sm:$0xff]   ;;  %v3028_v56 = vld [vmem:[#allocation8] sm:$0xff]  }
 0x107   : > { %2501 = vmatprep.subr.bf16.mxu0 %v2966_v10  ;;  %2689 = vmatprep.subr.bf16.mxu1 %v3023_v25  ;;  %v3019_v55 = vld [vmem:[%s3751_s20 + $0x70] ss:$8 sps:$4 sm:$0xff]   ;;  %v3032_v21 = vld [vmem:[#allocation8 + $0x20] sm:$0xff]   ;;  %s3264_s20 = sshll.u32 %s3387_s4, 4  ;;  %s3265_s20 = int_to_ptr.vmem [resolvable:$false] %s3264_s20 }
 0x108   : > { %s3266_s24 = scalar_lea.vmem %s3265_s20, 2048  ;;  %p3267_p5 = scmp.lt.s32.totalorder %s3860_s30, %s3265_s20 }
 0x109   : > { %p3268_p9 = scmp.lt.s32.totalorder %s3266_s24, %s3260_s0 }
 0x10a   : > { %2502 = vmatpush3.bf16.msra.mxu0 %v2967_v12  ;;  %2690 = vmatpush3.bf16.msra.mxu1 %v3023_v25  ;;  %v3033_v25 = vld [vmem:[#allocation8 + $0x28] sm:$0xff]  }
 0x10b   : > { %2503 = vmatprep.subr.bf16.mxu0 %v2968_v13  ;;  %2691 = vmatprep.subr.bf16.mxu1 %v3024_v43  ;;  %p3269_p4 = por %p3268_p9, %p3267_p5 }
 0x10d   : > { %p3270_p8 = pnand %p3269_p4, %p3263_p10 }
 0x10e   : > { %2504 = vmatpush3.bf16.msra.mxu0 %v2969_v14  ;;  %2692 = vmatpush3.bf16.msra.mxu1 %v3024_v43 }
 0x10f   : > { %2505 = vmatprep.subr.bf16.mxu0 %v2970_v15  ;;  %2693 = vmatprep.subr.bf16.mxu1 %v3025_v46 }
 0x112   : > { %2506 = vmatpush3.bf16.msra.mxu0 %v2971_v16  ;;  %2694 = vmatpush3.bf16.msra.mxu1 %v3025_v46 }
 0x113   : > { %2587 = vmatprep.subr.bf16.mxu0 %v2956_v0  ;;  %2695 = vmatprep.subr.bf16.mxu1 %v3026_v47 }
 0x115   : > { %786 = vmatmul.mubr.bf16.vlgmr.msra.gmra.mrb[0].mxu0 %v2972_v17 }
 0x116   : > { %2588 = vmatpush3.bf16.msra.mxu0 %v2957_v1  ;;  %793 = vmatprep.mubr.bf16.mxu0 %v2975_v18 }
 0x117   : > { %2589 = vmatprep.subr.bf16.mxu0 %v2958_v2  ;;  %2696 = vmatpush3.bf16.msra.mxu1 %v3026_v47 }
 0x118   : > { %2697 = vmatprep.subr.bf16.mxu1 %v3027_v50 }
 0x11a   : > { %2590 = vmatpush3.bf16.msra.mxu0 %v2959_v3 }
 0x11b   : > { %2591 = vmatprep.subr.bf16.mxu0 %v2960_v4  ;;  %2698 = vmatpush3.bf16.msra.mxu1 %v3027_v50 }
 0x11c   : > { %2715 = vmatprep.subr.bf16.mxu1 %v3028_v56 }
 0x11d   : > { %794 = vmatmul.mubr.bf16.gmra.mrb[4].mxu0 %v2977_v19 }
 0x11e   : > { %801 = vmatprep.mubr.bf16.mxu0 %v2978_v20  ;;  %2592 = vmatpush3.bf16.msra.mxu0 %v2961_v5 }
 0x11f   : > { %2593 = vmatprep.subr.bf16.mxu0 %v2962_v6 }
 0x122   : > { %2594 = vmatpush3.bf16.msra.mxu0 %v2963_v7  ;;  %v3029_v7 = vld [vmem:[#allocation8 + $0x8] sm:$0xff]  }
 0x123   : > { %2595 = vmatprep.subr.bf16.mxu0 %v2964_v8 }
 0x125   : > { %802 = vmatmul.mubr.bf16.gmra.mrb[8].mxu0 %v2980_v24 }
 0x126   : > { %809 = vmatprep.mubr.bf16.mxu0 %v2981_v26  ;;  %2596 = vmatpush3.bf16.msra.mxu0 %v2965_v9 }
 0x127   : > { %2597 = vmatprep.subr.bf16.mxu0 %v2966_v10 }
 0x12a   : > { %2598 = vmatpush3.bf16.msra.mxu0 %v2967_v12  ;;  %v3030_v12 = vld [vmem:[#allocation8 + $0x10] sm:$0xff]  }
 0x12b   : > { %2599 = vmatprep.subr.bf16.mxu0 %v2968_v13 }
 0x12d   : > { %810 = vmatmul.mubr.bf16.gmra.mrb[12].mxu0 %v2983_v27 }
 0x12e   : > { %817 = vmatprep.mubr.bf16.mxu0 %v2984_v28  ;;  %2600 = vmatpush3.bf16.msra.mxu0 %v2969_v14 }
 0x12f   : > { %2601 = vmatprep.subr.bf16.mxu0 %v2970_v15 }
 0x132   : > { %2602 = vmatpush3.bf16.msra.mxu0 %v2971_v16  ;;  %v3031_v16 = vld [vmem:[#allocation8 + $0x18] sm:$0xff]  }
 0x135   : > { %818 = vmatmul.mubr.bf16.gmra.mrb[16].mxu0 %v2986_v29 }
 0x136   : > { %825 = vmatprep.mubr.bf16.mxu0 %v2987_v30  ;;  %v3034_v30 = vld [vmem:[#allocation8 + $0x30] sm:$0xff]  }
 0x13d   : > { %826 = vmatmul.mubr.bf16.gmra.mrb[20].mxu0 %v2989_v31 }
 0x13e   : > { %833 = vmatprep.mubr.bf16.mxu0 %v2990_v32 }
 0x145   : > { %834 = vmatmul.mubr.bf16.gmra.mrb[24].mxu0 %v2992_v33 }
 0x146   : > { %841 = vmatprep.mubr.bf16.mxu0 %v2993_v34  ;;  %v3035_v34 = vld [vmem:[#allocation8 + $0x38] sm:$0xff]  }
 0x14d   : > { %842 = vmatmul.mubr.bf16.gmra.mrb[28].mxu0 %v2995_v35 }
 0x14e   : > { %1379 = vmatprep.mubr.bf16.mxu0 %v2998_v36 }
 0x155   : > { %1380 = vmatmul.mubr.bf16.vlgmr.msra.gmra.mrb[32].mxu0 %v2996_v37 }
 0x156   : > { %1387 = vmatprep.mubr.bf16.mxu0 %v2999_v38 }
 0x15d   : > { %1388 = vmatmul.mubr.bf16.gmra.mrb[36].mxu0 %v3001_v39  ;;  %v3038_v39 = vld [vmem:[#allocation13] sm:$0xff]  }
 0x15e   : > { %1395 = vmatprep.mubr.bf16.mxu0 %v3002_v40 }
 0x165   : > { %1396 = vmatmul.mubr.bf16.gmra.mrb[40].mxu0 %v3004_v41 }
 0x166   : > { %1403 = vmatprep.mubr.bf16.mxu0 %v3005_v42 }
 0x16d   : > { %1404 = vmatmul.mubr.bf16.gmra.mrb[44].mxu0 %v3007_v44 }
 0x16e   : > { %1411 = vmatprep.mubr.bf16.mxu0 %v3008_v45 }
 0x175   : > { %1412 = vmatmul.mubr.bf16.gmra.mrb[48].mxu0 %v3010_v48 }
 0x176   : > { %1419 = vmatprep.mubr.bf16.mxu0 %v3011_v49 }
 0x17d   : > { %1420 = vmatmul.mubr.bf16.gmra.mrb[52].mxu0 %v3013_v51 }
 0x17e   : > { %1427 = vmatprep.mubr.bf16.mxu0 %v3014_v52 }
 0x185   : > { %1428 = vmatmul.mubr.bf16.gmra.mrb[56].mxu0 %v3016_v53 }
 0x186   : > { %1435 = vmatprep.mubr.bf16.mxu0 %v3017_v54 }
 0x18d   : > { %1436 = vmatmul.mubr.bf16.gmra.mrb[60].mxu0 %v3019_v55 }
 0x1e8   : > { %v2507_v57 = vpop.f32.mrb[0].mxu0 }
 0x1e9   : > { %v2508_v58 = vpop.f32.mrb[1].mxu0 }
 0x1ea   : > { %v2509_v59 = vadd.f32 %v2508_v58, %v2507_v57  ;;  %v2510_v60 = vpop.f32.mrb[2].mxu0 }
 0x1eb   : > { %v2511_v61 = vpop.f32.mrb[3].mxu0 }
 0x1ec   : > { %v2512_v62 = vadd.f32 %v2511_v61, %v2510_v60 }
 0x1ee   : > { %v866_v63 = vpack.c.bf16 %v2512_v62, %v2509_v59 }
 0x1f0   : > { %v2513_v0 = vpop.f32.mrb[4].mxu0  ;;  %2699 = vmatprep.mubr.bf16.mxu1 %v866_v63 }
 0x1f1   : > { %v2514_v1 = vpop.f32.mrb[5].mxu0 }
 0x1f2   : > { %v2515_v2 = vadd.f32 %v2514_v1, %v2513_v0  ;;  %v2516_v3 = vpop.f32.mrb[6].mxu0  ;;  %v3809_v0 = vld [vmem:[%s3802_s21 + $0x8] sm:$0xff]   ;;  %v3812_v1 = vld [vmem:[%s3802_s21 + $0x10] sm:$0xff]  }
 0x1f3   : > { %v2517_v4 = vpop.f32.mrb[7].mxu0 }
 0x1f4   : > { %v2518_v5 = vadd.f32 %v2517_v4, %v2516_v3  ;;  %v3039_v3 = vld [vmem:[#allocation13 + $0x8] sm:$0xff]  }
 0x1f6   : > { %v867_v6 = vpack.c.bf16 %v2518_v5, %v2515_v2 }
 0x1f8   : > { %v2519_v8 = vpop.f32.mrb[8].mxu0  ;;  %2700 = vmatmul.mubr.bf16.vlgmr.msra.gmra.mrb[0].mxu1 %v867_v6 }
 0x1f9   : > { %v2520_v9 = vpop.f32.mrb[9].mxu0  ;;  %2716 = vmatpush3.bf16.msra.mxu1 %v3028_v56  ;;  %v3805_v56 = vld [vmem:[%s3802_s21] sm:$0xff]  }
 0x1fa   : > { %v2521_v10 = vadd.f32 %v2520_v9, %v2519_v8  ;;  %v2522_v11 = vpop.f32.mrb[10].mxu0  ;;  %2717 = vmatprep.subr.bf16.mxu1 %v3029_v7  ;;  %v3042_v8 = vld [vmem:[#allocation13 + $0x10] sm:$0xff]  }
 0x1fb   : > { %v2523_v13 = vpop.f32.mrb[11].mxu0 }
 0x1fc   : > { %v2524_v14 = vadd.f32 %v2523_v13, %v2522_v11  ;;  %v3817_v11 = vld [vmem:[%s3802_s21 + $0x18] sm:$0xff]  }
 0x1fd   : > { %2718 = vmatpush3.bf16.msra.mxu1 %v3029_v7 }
 0x1fe   : > { %v868_v15 = vpack.c.bf16 %v2524_v14, %v2521_v10  ;;  %2719 = vmatprep.subr.bf16.mxu1 %v3030_v12  ;;  %v3043_v14 = vld [vmem:[#allocation13 + $0x18] sm:$0xff]  }
 0x200   : > { %v2525_v17 = vpop.f32.mrb[12].mxu0  ;;  %2703 = vmatprep.mubr.bf16.mxu1 %v868_v15 }
 0x201   : > { %v2526_v18 = vpop.f32.mrb[13].mxu0  ;;  %2720 = vmatpush3.bf16.msra.mxu1 %v3030_v12  ;;  %v3820_v12 = vld [vmem:[%s3802_s21 + $0x20] sm:$0xff]  }
 0x202   : > { %v2527_v19 = vadd.f32 %v2526_v18, %v2525_v17  ;;  %v2528_v20 = vpop.f32.mrb[14].mxu0  ;;  %2721 = vmatprep.subr.bf16.mxu1 %v3031_v16 }
 0x203   : > { %v2529_v22 = vpop.f32.mrb[15].mxu0 }
 0x204   : > { %v2530_v23 = vadd.f32 %v2529_v22, %v2528_v20  ;;  %v3825_v22 = vld [vmem:[%s3802_s21 + $0x28] sm:$0xff]  }
 0x205   : > { %2722 = vmatpush3.bf16.msra.mxu1 %v3031_v16 }
 0x206   : > { %v869_v24 = vpack.c.bf16 %v2530_v23, %v2527_v19  ;;  %2723 = vmatprep.subr.bf16.mxu1 %v3032_v21  ;;  %v3046_v19 = vld [vmem:[#allocation13 + $0x20] sm:$0xff]   ;;  %v3828_v23 = vld [vmem:[%s3802_s21 + $0x30] sm:$0xff]  }
 0x208   : > { %v2531_v26 = vpop.f32.mrb[16].mxu0  ;;  %2704 = vmatmul.mubr.bf16.gmra.mrb[4].mxu1 %v869_v24 }
 0x209   : > { %v2532_v27 = vpop.f32.mrb[17].mxu0  ;;  %2724 = vmatpush3.bf16.msra.mxu1 %v3032_v21 }
 0x20a   : > { %v2533_v28 = vadd.f32 %v2532_v27, %v2531_v26  ;;  %v2534_v29 = vpop.f32.mrb[18].mxu0  ;;  %2725 = vmatprep.subr.bf16.mxu1 %v3033_v25 }
 0x20b   : > { %v2535_v31 = vpop.f32.mrb[19].mxu0 }
 0x20c   : > { %v2536_v32 = vadd.f32 %v2535_v31, %v2534_v29 }
 0x20d   : > { %2726 = vmatpush3.bf16.msra.mxu1 %v3033_v25  ;;  %v3047_v25 = vld [vmem:[#allocation13 + $0x28] sm:$0xff]  }
 0x20e   : > { %v870_v33 = vpack.c.bf16 %v2536_v32, %v2533_v28  ;;  %2727 = vmatprep.subr.bf16.mxu1 %v3034_v30 }
 0x210   : > { %v2537_v35 = vpop.f32.mrb[20].mxu0  ;;  %2707 = vmatprep.mubr.bf16.mxu1 %v870_v33  ;;  %v3833_v33 = vld [vmem:[%s3802_s21 + $0x38] sm:$0xff]  }
 0x211   : > { %v2538_v36 = vpop.f32.mrb[21].mxu0  ;;  %2728 = vmatpush3.bf16.msra.mxu1 %v3034_v30  ;;  %v3050_v30 = vld [vmem:[#allocation13 + $0x30] sm:$0xff]  }
 0x212   : > { %v2539_v37 = vadd.f32 %v2538_v36, %v2537_v35  ;;  %v2540_v38 = vpop.f32.mrb[22].mxu0  ;;  %2729 = vmatprep.subr.bf16.mxu1 %v3035_v34  ;;  %v3051_v35 = vld [vmem:[#allocation13 + $0x38] sm:$0xff]  }
 0x213   : > { %v2541_v40 = vpop.f32.mrb[23].mxu0 }
 0x214   : > { %v2542_v41 = vadd.f32 %v2541_v40, %v2540_v38  ;;  %v3052_v40 = vld [vmem:[#allocation11] sm:$0xff]  }
 0x215   : > { %2730 = vmatpush3.bf16.msra.mxu1 %v3035_v34 }
 0x216   : > { %v871_v42 = vpack.c.bf16 %v2542_v41, %v2539_v37  ;;  %2747 = vmatprep.subr.bf16.mxu1 %v3038_v39 }
 0x218   : > { %v2543_v43 = vpop.f32.mrb[24].mxu0  ;;  %2708 = vmatmul.mubr.bf16.gmra.mrb[8].mxu1 %v871_v42 }
 0x219   : > { %v2544_v44 = vpop.f32.mrb[25].mxu0 }
 0x21a   : > { %v2545_v45 = vadd.f32 %v2544_v44, %v2543_v43  ;;  %v2546_v46 = vpop.f32.mrb[26].mxu0  ;;  %v3053_v44 = vld [vmem:[#allocation11 + $0x8] sm:$0xff]  }
 0x21b   : > { %v2547_v47 = vpop.f32.mrb[27].mxu0 }
 0x21c   : > { %v2548_v48 = vadd.f32 %v2547_v47, %v2546_v46 }
 0x21e   : > { %v872_v49 = vpack.c.bf16 %v2548_v48, %v2545_v45 }
 0x220   : > { %v2549_v50 = vpop.f32.mrb[28].mxu0  ;;  %2711 = vmatprep.mubr.bf16.mxu1 %v872_v49  ;;  %v3054_v49 = vld [vmem:[#allocation11 + $0x10] sm:$0xff]  }
 0x221   : > { %v2550_v51 = vpop.f32.mrb[29].mxu0 }
 0x222   : > { %v2551_v52 = vadd.f32 %v2550_v51, %v2549_v50  ;;  %v2552_v53 = vpop.f32.mrb[30].mxu0 }
 0x223   : > { %v2553_v54 = vpop.f32.mrb[31].mxu0 }
 0x224   : > { %v2554_v55 = vadd.f32 %v2553_v54, %v2552_v53  ;;  %v3055_v53 = vld [vmem:[#allocation11 + $0x18] sm:$0xff]  }
 0x226   : > { %v873_v57 = vpack.c.bf16 %v2554_v55, %v2551_v52 }
 0x228   : > { %2712 = vmatmul.mubr.bf16.gmra.mrb[12].mxu1 %v873_v57  ;;  %v2603_v58 = vpop.f32.mrb[32].mxu0 }
 0x229   : > { %v2604_v59 = vpop.f32.mrb[33].mxu0  ;;  %2731 = vmatprep.mubr.bf16.mxu1 %v3805_v56 }
 0x22a   : > { %v2605_v60 = vadd.f32 %v2604_v59, %v2603_v58  ;;  %v2606_v61 = vpop.f32.mrb[34].mxu0  ;;  %v3056_v59 = vld [vmem:[#allocation11 + $0x20] sm:$0xff]  }
 0x22b   : > { %v2607_v62 = vpop.f32.mrb[35].mxu0 }
 0x22c   : > { %v2608_v63 = vadd.f32 %v2607_v62, %v2606_v61 }
 0x22e   : > { %v1460_v2 = vpack.c.bf16 %v2608_v63, %v2605_v60  ;;  %v3057_v63 = vld [vmem:[#allocation11 + $0x28] sm:$0xff]  }
 0x230   : > { %2732 = vmatmul.mubr.bf16.vlgmr.msra.gmra.mrb[0].mxu1 %v3809_v0  ;;  %v2609_v4 = vpop.f32.mrb[36].mxu0 }
 0x231   : > { %v2610_v5 = vpop.f32.mrb[37].mxu0  ;;  %2748 = vmatpush3.bf16.msra.mxu1 %v3038_v39  ;;  %2735 = vmatprep.mubr.bf16.mxu1 %v3812_v1 }
 0x232   : > { %v2611_v6 = vadd.f32 %v2610_v5, %v2609_v4  ;;  %v2612_v7 = vpop.f32.mrb[38].mxu0  ;;  %2749 = vmatprep.subr.bf16.mxu1 %v3039_v3 }
 0x233   : > { %v2613_v9 = vpop.f32.mrb[39].mxu0 }
 0x234   : > { %v2614_v10 = vadd.f32 %v2613_v9, %v2612_v7 }
 0x235   : > { %2750 = vmatpush3.bf16.msra.mxu1 %v3039_v3 }
 0x236   : > { %v1461_v13 = vpack.c.bf16 %v2614_v10, %v2611_v6  ;;  %2751 = vmatprep.subr.bf16.mxu1 %v3042_v8  ;;  %v3058_v6 = vld [vmem:[#allocation11 + $0x30] sm:$0xff]   ;;  %v3059_v10 = vld [vmem:[#allocation11 + $0x38] sm:$0xff]  }
 0x238   : > { %2736 = vmatmul.mubr.bf16.gmra.mrb[4].mxu1 %v3817_v11  ;;  %v2615_v15 = vpop.f32.mrb[40].mxu0 }
 0x239   : > { %v2616_v16 = vpop.f32.mrb[41].mxu0  ;;  %2752 = vmatpush3.bf16.msra.mxu1 %v3042_v8  ;;  %2739 = vmatprep.mubr.bf16.mxu1 %v3820_v12 }
 0x23a   : > { %v2617_v17 = vadd.f32 %v2616_v16, %v2615_v15  ;;  %v2618_v18 = vpop.f32.mrb[42].mxu0  ;;  %2753 = vmatprep.subr.bf16.mxu1 %v3043_v14 }
 0x23b   : > { %v2619_v20 = vpop.f32.mrb[43].mxu0 }
 0x23c   : > { %v2620_v21 = vadd.f32 %v2619_v20, %v2618_v18 }
 0x23d   : > { %2754 = vmatpush3.bf16.msra.mxu1 %v3043_v14 }
 0x23e   : > { %v1462_v24 = vpack.c.bf16 %v2620_v21, %v2617_v17  ;;  %2755 = vmatprep.subr.bf16.mxu1 %v3046_v19 }
 0x240   : > { %2740 = vmatmul.mubr.bf16.gmra.mrb[8].mxu1 %v3825_v22  ;;  %v2621_v26 = vpop.f32.mrb[44].mxu0 }
 0x241   : > { %v2622_v27 = vpop.f32.mrb[45].mxu0  ;;  %2756 = vmatpush3.bf16.msra.mxu1 %v3046_v19  ;;  %2743 = vmatprep.mubr.bf16.mxu1 %v3828_v23 }
 0x242   : > { %v2623_v28 = vadd.f32 %v2622_v27, %v2621_v26  ;;  %v2624_v29 = vpop.f32.mrb[46].mxu0  ;;  %2757 = vmatprep.subr.bf16.mxu1 %v3047_v25 }
 0x243   : > { %v2625_v31 = vpop.f32.mrb[47].mxu0 }
 0x244   : > { %v2626_v32 = vadd.f32 %v2625_v31, %v2624_v29 }
 0x245   : > { %2758 = vmatpush3.bf16.msra.mxu1 %v3047_v25 }
 0x246   : > { %v1463_v34 = vpack.c.bf16 %v2626_v32, %v2623_v28  ;;  %2759 = vmatprep.subr.bf16.mxu1 %v3050_v30 }
 0x248   : > { %2744 = vmatmul.mubr.bf16.gmra.mrb[12].mxu1 %v3833_v33  ;;  %v2627_v36 = vpop.f32.mrb[48].mxu0 }
 0x249   : > { %v2628_v37 = vpop.f32.mrb[49].mxu0  ;;  %2760 = vmatpush3.bf16.msra.mxu1 %v3050_v30  ;;  %2763 = vmatprep.mubr.bf16.mxu1 %v1460_v2 }
 0x24a   : > { %v2629_v38 = vadd.f32 %v2628_v37, %v2627_v36  ;;  %v2630_v39 = vpop.f32.mrb[50].mxu0  ;;  %2761 = vmatprep.subr.bf16.mxu1 %v3051_v35 }
 0x24b   : > { %v2631_v41 = vpop.f32.mrb[51].mxu0 }
 0x24c   : > { %v2632_v42 = vadd.f32 %v2631_v41, %v2630_v39 }
 0x24d   : > { %2762 = vmatpush3.bf16.msra.mxu1 %v3051_v35 }
 0x24e   : > { %v1464_v43 = vpack.c.bf16 %v2632_v42, %v2629_v38  ;;  %2779 = vmatprep.subr.bf16.mxu1 %v3052_v40 }
 0x250   : > { %v2633_v45 = vpop.f32.mrb[52].mxu0  ;;  %2764 = vmatmul.mubr.bf16.vlgmr.msra.gmra.mrb[16].mxu1 %v1461_v13 }
 0x251   : > { %v2634_v46 = vpop.f32.mrb[53].mxu0  ;;  %2767 = vmatprep.mubr.bf16.mxu1 %v1462_v24  ;;  %2780 = vmatpush3.bf16.msra.mxu1 %v3052_v40 }
 0x252   : > { %v2635_v47 = vadd.f32 %v2634_v46, %v2633_v45  ;;  %v2636_v48 = vpop.f32.mrb[54].mxu0  ;;  %2781 = vmatprep.subr.bf16.mxu1 %v3053_v44 }
 0x253   : > { %v2637_v50 = vpop.f32.mrb[55].mxu0 }
 0x254   : > { %v2638_v51 = vadd.f32 %v2637_v50, %v2636_v48 }
 0x255   : > { %2782 = vmatpush3.bf16.msra.mxu1 %v3053_v44 }
 0x256   : > { %v1465_v52 = vpack.c.bf16 %v2638_v51, %v2635_v47  ;;  %2783 = vmatprep.subr.bf16.mxu1 %v3054_v49 }
 0x258   : > { %v2639_v54 = vpop.f32.mrb[56].mxu0  ;;  %2768 = vmatmul.mubr.bf16.gmra.mrb[20].mxu1 %v1463_v34 }
 0x259   : > { %v2640_v55 = vpop.f32.mrb[57].mxu0  ;;  %2771 = vmatprep.mubr.bf16.mxu1 %v1464_v43  ;;  %2784 = vmatpush3.bf16.msra.mxu1 %v3054_v49 }
 0x25a   : > { %v2641_v57 = vadd.f32 %v2640_v55, %v2639_v54  ;;  %v2642_v58 = vpop.f32.mrb[58].mxu0  ;;  %2785 = vmatprep.subr.bf16.mxu1 %v3055_v53 }
 0x25b   : > { %v2643_v60 = vpop.f32.mrb[59].mxu0 }
 0x25c   : > { %v2644_v61 = vadd.f32 %v2643_v60, %v2642_v58 }
 0x25d   : > { %2786 = vmatpush3.bf16.msra.mxu1 %v3055_v53 }
 0x25e   : > { %v1466_v62 = vpack.c.bf16 %v2644_v61, %v2641_v57  ;;  %2787 = vmatprep.subr.bf16.mxu1 %v3056_v59 }
 0x260   : > { %v2645_v2 = vpop.f32.mrb[60].mxu0  ;;  %2772 = vmatmul.mubr.bf16.gmra.mrb[24].mxu1 %v1465_v52 }
 0x261   : > { %v2646_v3 = vpop.f32.mrb[61].mxu0  ;;  %2775 = vmatprep.mubr.bf16.mxu1 %v1466_v62  ;;  %2788 = vmatpush3.bf16.msra.mxu1 %v3056_v59 }
 0x262   : > { %v2647_v4 = vadd.f32 %v2646_v3, %v2645_v2  ;;  %v2648_v5 = vpop.f32.mrb[62].mxu0  ;;  %2789 = vmatprep.subr.bf16.mxu1 %v3057_v63 }
 0x263   : > { %v2649_v7 = vpop.f32.mrb[63].mxu0 }
 0x264   : > { %v2650_v8 = vadd.f32 %v2649_v7, %v2648_v5 }
 0x265   : > { %2790 = vmatpush3.bf16.msra.mxu1 %v3057_v63 }
 0x266   : > { %v1467_v9 = vpack.c.bf16 %v2650_v8, %v2647_v4  ;;  %2791 = vmatprep.subr.bf16.mxu1 %v3058_v6 }
 0x268   : > { %2776 = vmatmul.mubr.bf16.gmra.mrb[28].mxu1 %v1467_v9 }
 0x269   : > { %2792 = vmatpush3.bf16.msra.mxu1 %v3058_v6  ;;  %2795 = vmatprep.mubr.bf16.mxu1 %v3805_v56  ;;  %v2285_v56 = vld [vmem:[%s3973_s5] ss:$0 sm:$0xff] }
 0x26a   : > { %2793 = vmatprep.subr.bf16.mxu1 %v3059_v10 }
 0x26d   : > { %2794 = vmatpush3.bf16.msra.mxu1 %v3059_v10 }
 0x270   : > { %2796 = vmatmul.mubr.bf16.vlgmr.msra.gmra.mrb[16].mxu1 %v3809_v0 }
 0x271   : > { %2799 = vmatprep.mubr.bf16.mxu1 %v3812_v1 }
 0x278   : > { %2800 = vmatmul.mubr.bf16.gmra.mrb[20].mxu1 %v3817_v11 }
 0x279   : > { %2803 = vmatprep.mubr.bf16.mxu1 %v3820_v12 }
 0x280   : > { %2804 = vmatmul.mubr.bf16.gmra.mrb[24].mxu1 %v3825_v22 }
 0x281   : > { %2807 = vmatprep.mubr.bf16.mxu1 %v3828_v23 }
 0x288   : > { %2808 = vmatmul.mubr.bf16.gmra.mrb[28].mxu1 %v3833_v33 }
 0x303   : > { %v2733_v13 = vpop.f32.mrb[0].mxu1 }
 0x304   : > { %v1237_v14 = vadd.f32 %v2733_v13, %v2285_v56  ;;  %v1165_v0 = vpop.f32.mrb[1].mxu1 }
 0x305   : > { %v1235_v15 = vadd.f32 %v2285_v56, %v1165_v0  ;;  %v2734_v1 = vpop.f32.mrb[2].mxu1 }
 0x306   : > { %v1238_v11 = vadd.f32 %v2734_v1, %v2285_v56  ;;  %v1168_v16 = vpop.f32.mrb[3].mxu1  ;;  %v1799_v17 = vmax.f32 %v1237_v14, 0.0 }
 0x307   : > { %v1236_v12 = vadd.f32 %v2285_v56, %v1168_v16  ;;  %v1797_v19 = vmax.f32 %v1235_v15, 0.0 }
 0x308   : > { %v1800_v18 = vmax.f32 %v1238_v11, 0.0 }
 0x309   : > { %v1798_v20 = vmax.f32 %v1236_v12, 0.0 }
 0x30a   : > { %v2405_v21 = vpack.c.bf16 %v1800_v18, %v1799_v17 }
 0x30b   : > { %v2400_v22 = vpack.c.bf16 %v1798_v20, %v1797_v19  ;;  %v2737_v23 = vpop.f32.mrb[4].mxu1 }
 0x30c   : > { %2477 = vst [vmem:[%s3850_s3 + $0x8] sm:$0xff] %v2405_v21   ;;  %v1241_v24 = vadd.f32 %v2737_v23, %v2285_v56  ;;  %v1181_v25 = vpop.f32.mrb[5].mxu1 }
 0x30d   : > { %2401 = vst [vmem:[%s3850_s3] sm:$0xff] %v2400_v22   ;;  %v1239_v26 = vadd.f32 %v2285_v56, %v1181_v25  ;;  %v2738_v27 = vpop.f32.mrb[6].mxu1 }
 0x30e   : > { %v1242_v28 = vadd.f32 %v2738_v27, %v2285_v56  ;;  %v1184_v29 = vpop.f32.mrb[7].mxu1  ;;  %v1803_v31 = vmax.f32 %v1241_v24, 0.0 }
 0x30f   : > { %v1240_v30 = vadd.f32 %v2285_v56, %v1184_v29  ;;  %v1801_v33 = vmax.f32 %v1239_v26, 0.0 }
 0x310   : > { %v1804_v32 = vmax.f32 %v1242_v28, 0.0 }
 0x311   : > { %v1802_v34 = vmax.f32 %v1240_v30, 0.0 }
 0x312   : > { %v2415_v35 = vpack.c.bf16 %v1804_v32, %v1803_v31 }
 0x313   : > { %v2410_v36 = vpack.c.bf16 %v1802_v34, %v1801_v33  ;;  %v2741_v37 = vpop.f32.mrb[8].mxu1 }
 0x314   : > { %2479 = vst [vmem:[%s3850_s3 + $0x18] sm:$0xff] %v2415_v35   ;;  %v1245_v38 = vadd.f32 %v2741_v37, %v2285_v56  ;;  %v1197_v39 = vpop.f32.mrb[9].mxu1 }
 0x315   : > { %2478 = vst [vmem:[%s3850_s3 + $0x10] sm:$0xff] %v2410_v36   ;;  %v1243_v40 = vadd.f32 %v2285_v56, %v1197_v39  ;;  %v2742_v41 = vpop.f32.mrb[10].mxu1 }
 0x316   : > { %v1246_v42 = vadd.f32 %v2742_v41, %v2285_v56  ;;  %v1200_v43 = vpop.f32.mrb[11].mxu1  ;;  %v1807_v45 = vmax.f32 %v1245_v38, 0.0 }
 0x317   : > { %v1244_v44 = vadd.f32 %v2285_v56, %v1200_v43  ;;  %v1805_v47 = vmax.f32 %v1243_v40, 0.0 }
 0x318   : > { %v1808_v46 = vmax.f32 %v1246_v42, 0.0 }
 0x319   : > { %v1806_v48 = vmax.f32 %v1244_v44, 0.0 }
 0x31a   : > { %v2425_v49 = vpack.c.bf16 %v1808_v46, %v1807_v45 }
 0x31b   : > { %v2420_v50 = vpack.c.bf16 %v1806_v48, %v1805_v47  ;;  %v2745_v51 = vpop.f32.mrb[12].mxu1 }
 0x31c   : > { %2481 = vst [vmem:[%s3850_s3 + $0x28] sm:$0xff] %v2425_v49   ;;  %v1249_v52 = vadd.f32 %v2745_v51, %v2285_v56  ;;  %v1213_v53 = vpop.f32.mrb[13].mxu1 }
 0x31d   : > { %2480 = vst [vmem:[%s3850_s3 + $0x20] sm:$0xff] %v2420_v50   ;;  %v1247_v54 = vadd.f32 %v2285_v56, %v1213_v53  ;;  %v2746_v55 = vpop.f32.mrb[14].mxu1 }
 0x31e   : > { %v1250_v57 = vadd.f32 %v2746_v55, %v2285_v56  ;;  %v1216_v58 = vpop.f32.mrb[15].mxu1  ;;  %v1811_v60 = vmax.f32 %v1249_v52, 0.0 }
 0x31f   : > { %v1248_v59 = vadd.f32 %v2285_v56, %v1216_v58  ;;  %v1809_v62 = vmax.f32 %v1247_v54, 0.0 }
 0x320   : > { %v1812_v61 = vmax.f32 %v1250_v57, 0.0 }
 0x321   : > { %v1810_v63 = vmax.f32 %v1248_v59, 0.0 }
 0x322   : > { %v2435_v2 = vpack.c.bf16 %v1812_v61, %v1811_v60 }
 0x323   : > { %v2430_v3 = vpack.c.bf16 %v1810_v63, %v1809_v62 }
 0x324   : > { %2483 = vst [vmem:[%s3850_s3 + $0x38] sm:$0xff] %v2435_v2  }
 0x325   : > { %2482 = vst [vmem:[%s3850_s3 + $0x30] sm:$0xff] %v2430_v3  }
 0x326   : > { %3273 = shalt.err (!%p3270_p8)
}
 0x327   : > { %s3274_s25 = scalar_lea.hbm %s3867_s27, 1024  ;;  %s3278_s17 = scalar_lea.hbm %s3977_s9, 2048 }
 0x328   : > { %p3275_p11 = scmp.ne.s32.totalorder %s3867_s27, %s3274_s25  ;;  %p3279_p1 = scmp.lt.u32.totalorder %s3867_s27, %s3977_s9 }
 0x329   : > { %p3280_p13 = scmp.lt.u32.totalorder %s3278_s17, %s3274_s25  ;;  %p3282_p7 = scmp.lt.u32.totalorder %s3274_s25, %s3867_s27 }
 0x32a   : > { %p3276_p3 = pnand %p3275_p11, %p4012_p2 }
 0x32b   : > { %p3281_p0 = por %p3280_p13, %p3279_p1 }
 0x32c   : > { %p3277_p12 = pneg %p3276_p3 }
 0x32d   : > { %p3283_p6 = por %p3282_p7, %p3281_p0 }
 0x32f   : > { %p3284_p10 = pnand %p3283_p6, %p3277_p12 }
 0x331   : > { %3287 = shalt.err (!%p3284_p10)
}
 0x332   : > { %s3388_s12 = smov 64   ;;  %s3389_s22 = smov 4  }
 0x333   : > { %2867 = dma.vmem_to_hbm [thread:$0]  (%p4012_p2), %s3860_s30, 1024, %s3867_s27, %s1990_s23, %s3388_s12, %s3388_s12, %s3389_s22  }
 0x334   : > { %s4013_s20 = sld [smem:[#allocation29_spill]]  ;;  %s3903_s30 = scalar_lea.vmem [#allocation15], %s2225_s29 }
 0x335   : > { %s2024_s29 = sshll.u32 %s3903_s30, 4  ;;  %s4014_s24 = sld [smem:[#allocation30_spill]]  ;;  %s3912_s29 = int_to_ptr.vmem [resolvable:$true] %s2024_s29 }
 0x336   : > { %s1995_s2 = scalar_lea.sflag [#allocation16], %s3740_s6  ;;  %s3288_s21 = scalar_lea.vmem %s3912_s29, 1024 }
 0x337   : > { %p3289_p5 = scmp.ne.s32.totalorder %s3912_s29, %s3288_s21  ;;  %s3390_s17 = smov [#allocation15]  }
 0x338   : > { %s3292_s18 = sshll.u32 %s3390_s17, 4  ;;  %s3293_s18 = int_to_ptr.vmem [resolvable:$false] %s3292_s18 }
 0x339   : > { %p3290_p9 = pnand %p3289_p5, %p4012_p2  ;;  %s3294_s3 = scalar_lea.vmem %s3293_s18, 2048 }
 0x33a   : > { %v2318_v4 = vld [vmem:[%s4013_s20] ss:$0 sm:$0xff]  ;;  %p3295_p8 = scmp.lt.s32.totalorder %s3912_s29, %s3293_s18  ;;  %p3296_p11 = scmp.lt.s32.totalorder %s3294_s3, %s3288_s21 }
 0x33b   : > { %s3919_s25 = scalar_lea.hbm %s4014_s24, %s2395_s8  ;;  %p3291_p4 = pneg %p3290_p9 }
 0x33c   : > { %p3297_p3 = por %p3296_p11, %p3295_p8 }
 0x33e   : > { %p3298_p12 = pnand %p3297_p3, %p3291_p4 }
 0x343   : > { %v2797_v5 = vpop.f32.mrb[16].mxu1 }
 0x344   : > { %v1783_v6 = vadd.f32 %v2797_v5, %v2318_v4  ;;  %v1711_v7 = vpop.f32.mrb[17].mxu1 }
 0x345   : > { %v1781_v8 = vadd.f32 %v2318_v4, %v1711_v7  ;;  %v2798_v9 = vpop.f32.mrb[18].mxu1 }
 0x346   : > { %v1784_v10 = vadd.f32 %v2798_v9, %v2318_v4  ;;  %v1714_v56 = vpop.f32.mrb[19].mxu1  ;;  %v1895_v14 = vmax.f32 %v1783_v6, 0.0 }
 0x347   : > { %v1782_v13 = vadd.f32 %v2318_v4, %v1714_v56  ;;  %v1893_v15 = vmax.f32 %v1781_v8, 0.0 }
 0x348   : > { %v1896_v0 = vmax.f32 %v1784_v10, 0.0 }
 0x349   : > { %v1894_v1 = vmax.f32 %v1782_v13, 0.0 }
 0x34a   : > { %v2445_v11 = vpack.c.bf16 %v1896_v0, %v1895_v14 }
 0x34b   : > { %v2440_v16 = vpack.c.bf16 %v1894_v1, %v1893_v15  ;;  %v2801_v12 = vpop.f32.mrb[20].mxu1 }
 0x34c   : > { %2484 = vst [vmem:[%s3903_s30 + $0x8] sm:$0xff] %v2445_v11   ;;  %v1787_v17 = vadd.f32 %v2801_v12, %v2318_v4  ;;  %v1727_v18 = vpop.f32.mrb[21].mxu1 }
 0x34d   : > { %2441 = vst [vmem:[%s3903_s30] sm:$0xff] %v2440_v16   ;;  %v1785_v19 = vadd.f32 %v2318_v4, %v1727_v18  ;;  %v2802_v20 = vpop.f32.mrb[22].mxu1 }
 0x34e   : > { %v1788_v21 = vadd.f32 %v2802_v20, %v2318_v4  ;;  %v1730_v22 = vpop.f32.mrb[23].mxu1  ;;  %v1899_v24 = vmax.f32 %v1787_v17, 0.0 }
 0x34f   : > { %v1786_v23 = vadd.f32 %v2318_v4, %v1730_v22  ;;  %v1897_v26 = vmax.f32 %v1785_v19, 0.0 }
 0x350   : > { %v1900_v25 = vmax.f32 %v1788_v21, 0.0 }
 0x351   : > { %v1898_v27 = vmax.f32 %v1786_v23, 0.0 }
 0x352   : > { %v2455_v28 = vpack.c.bf16 %v1900_v25, %v1899_v24 }
 0x353   : > { %v2450_v29 = vpack.c.bf16 %v1898_v27, %v1897_v26  ;;  %v2805_v30 = vpop.f32.mrb[24].mxu1 }
 0x354   : > { %2486 = vst [vmem:[%s3903_s30 + $0x18] sm:$0xff] %v2455_v28   ;;  %v1791_v31 = vadd.f32 %v2805_v30, %v2318_v4  ;;  %v1743_v32 = vpop.f32.mrb[25].mxu1 }
 0x355   : > { %2485 = vst [vmem:[%s3903_s30 + $0x10] sm:$0xff] %v2450_v29   ;;  %v1789_v33 = vadd.f32 %v2318_v4, %v1743_v32  ;;  %v2806_v34 = vpop.f32.mrb[26].mxu1 }
 0x356   : > { %v1792_v35 = vadd.f32 %v2806_v34, %v2318_v4  ;;  %v1746_v36 = vpop.f32.mrb[27].mxu1  ;;  %v1903_v38 = vmax.f32 %v1791_v31, 0.0 }
 0x357   : > { %v1790_v37 = vadd.f32 %v2318_v4, %v1746_v36  ;;  %v1901_v40 = vmax.f32 %v1789_v33, 0.0 }
 0x358   : > { %v1904_v39 = vmax.f32 %v1792_v35, 0.0 }
 0x359   : > { %v1902_v41 = vmax.f32 %v1790_v37, 0.0 }
 0x35a   : > { %v2465_v42 = vpack.c.bf16 %v1904_v39, %v1903_v38 }
 0x35b   : > { %v2460_v43 = vpack.c.bf16 %v1902_v41, %v1901_v40  ;;  %v2809_v44 = vpop.f32.mrb[28].mxu1 }
 0x35c   : > { %2488 = vst [vmem:[%s3903_s30 + $0x28] sm:$0xff] %v2465_v42   ;;  %v1795_v45 = vadd.f32 %v2809_v44, %v2318_v4  ;;  %v1759_v46 = vpop.f32.mrb[29].mxu1 }
 0x35d   : > { %2487 = vst [vmem:[%s3903_s30 + $0x20] sm:$0xff] %v2460_v43   ;;  %v1793_v47 = vadd.f32 %v2318_v4, %v1759_v46  ;;  %v2810_v48 = vpop.f32.mrb[30].mxu1 }
 0x35e   : > { %v1796_v49 = vadd.f32 %v2810_v48, %v2318_v4  ;;  %v1762_v50 = vpop.f32.mrb[31].mxu1  ;;  %v1907_v52 = vmax.f32 %v1795_v45, 0.0 }
 0x35f   : > { %v1794_v51 = vadd.f32 %v2318_v4, %v1762_v50  ;;  %v1905_v54 = vmax.f32 %v1793_v47, 0.0 }
 0x360   : > { %v1908_v53 = vmax.f32 %v1796_v49, 0.0 }
 0x361   : > { %v1906_v55 = vmax.f32 %v1794_v51, 0.0 }
 0x362   : > { %v2475_v57 = vpack.c.bf16 %v1908_v53, %v1907_v52 }
 0x363   : > { %v2470_v58 = vpack.c.bf16 %v1906_v55, %v1905_v54 }
 0x364   : > { %2490 = vst [vmem:[%s3903_s30 + $0x38] sm:$0xff] %v2475_v57  }
 0x365   : > { %2489 = vst [vmem:[%s3903_s30 + $0x30] sm:$0xff] %v2470_v58  }
 0x366   : > { %3301 = shalt.err (!%p3298_p12)
}
 0x367   : > { %s3302_s19 = scalar_lea.hbm %s3919_s25, 1024  ;;  %s3306_s4 = scalar_lea.hbm %s4014_s24, 2048 }
 0x368   : > { %p3303_p1 = scmp.ne.s32.totalorder %s3919_s25, %s3302_s19  ;;  %p3307_p7 = scmp.lt.u32.totalorder %s3919_s25, %s4014_s24 }
 0x369   : > { %p3308_p6 = scmp.lt.u32.totalorder %s3306_s4, %s3302_s19  ;;  %p3310_p5 = scmp.lt.u32.totalorder %s3302_s19, %s3919_s25 }
 0x36a   : > { %p3304_p13 = pnand %p3303_p1, %p4012_p2 }
 0x36b   : > { %p3309_p10 = por %p3308_p6, %p3307_p7 }
 0x36c   : > { %p3305_p0 = pneg %p3304_p13 }
 0x36d   : > { %p3311_p9 = por %p3310_p5, %p3309_p10 }
 0x36f   : > { %p3312_p4 = pnand %p3311_p9, %p3305_p0 }
 0x371   : > { %3315 = shalt.err (!%p3312_p4)
}
 0x372   : > { %2868 = dma.vmem_to_hbm [thread:$0]  (%p4012_p2), %s3912_s29, 1024, %s3919_s25, %s1995_s2, %s3388_s12, %s3388_s12, %s3389_s22  }
 0x373 PF: > { %s2039_s27 = sand.u32 1, %s3362_s13   ;;  %p4015_p8 = scmp.ne.s32.totalorder %s4001_s28, 0 }
 0x374   : > { %p4016_p11 = scmp.ge.s32.totalorder %s3374_s16, 2  ;;  %s2040_s23 = scalar_lea.sflag [#allocation4], %s2039_s27 }
 0x376   : > { %p2895_p3 = pnand %p4016_p11, %p4015_p8 }
 0x378   : > { %3353 = dma.done.wait (!%p2895_p3), %s2040_s23, 1024  }
 0x379   : > { %3355 = vsyncadd (!%p2895_p3), %s2040_s23, 4294966272  ;;  %s2049_s26 = scalar_lea.sflag [#allocation16], %s2039_s27 }
 0x37a   : > { %3357 = dma.done.wait (!%p2895_p3), %s2049_s26, 1024  }
 0x37b   : > { %3359 = vsyncadd (!%p2895_p3), %s2049_s26, 4294966272  ;;  %p32_p2 = scmp.ge.s32.totalorder %s3619_s11, 4   ;;  %s4017_s13 = smov %s3366_s14 }
 0x37c   : > { %s4018_s14 = smov %s3370_s15  ;;  %s4019_s15 = smov %s3631_s10 }
 0x37d   : > { %s4020_s16 = smov %s3619_s11  ;;  %34 = sbr.rel (!%p32_p2) target bundleno = 19 (0x13), region = 152 }
 0x384   :  { %2054 = vsyncpa [#allocation3], 1 }
 0x385   :  { %2056 = vsyncpa [#allocation3 + $0x1], 1 }
 0x386   :  { %2057 = vsyncpa [#allocation6], 1 }
 0x387   :  { %2059 = vsyncpa [#allocation6 + $0x1], 1 }
 0x388   :  { %2060 = vsyncpa [#allocation9], 1 }
 0x389   :  { %2061 = vsyncpa [#allocation12], 1 }
 0x38a   :  { %2062 = vsyncpa [#allocation4], 1 }
 0x38b   :  { %2064 = vsyncpa [#allocation4 + $0x1], 1 }
 0x38c   :  { %2065 = vsyncpa [#allocation16], 1 }
 0x38d   :  { %2067 = vsyncpa [#allocation16 + $0x1], 1 }

</bundles_post_ra>
